<compile_context>
chip_gen: v7x
topology: tpu7x:2x2x1
jax: 0.10.0
libtpu: 0.0.40
codegen_flags: <defaults>
</compile_context>

<pallas_src>
import functools

import jax
import jax.numpy as jnp
import numpy as np
from jax import lax
from jax.experimental import pallas as pl
from jax.experimental.pallas import tpu as pltpu

_IGNORE_INDEX = 255
_SMOOTH_FACTOR = 0.05   # SoftCrossEntropyLoss(smooth_factor=0.05)
_DICE_SMOOTH = 0.05     # DiceLoss(smooth=0.05)
_DICE_EPS = 1e-7        # DiceLoss default eps
_EDGE_FACTOR = 1.0


def _shifted(x, di, dj, row_idx, col_idx, H, W):
    """y[i, j] = x[i+di, j+dj] if in bounds else 0 (zero padding), via XLU rolls."""
    y = x
    if di != 0:
        y = pltpu.roll(y, shift=(-di) % H, axis=0)
        if di > 0:
            y = jnp.where(row_idx < H - di, y, 0.0)
        else:
            y = jnp.where(row_idx >= -di, y, 0.0)
    if dj != 0:
        y = pltpu.roll(y, shift=(-dj) % W, axis=1)
        if dj > 0:
            y = jnp.where(col_idx < W - dj, y, 0.0)
        else:
            y = jnp.where(col_idx >= -dj, y, 0.0)
    return y


def _boundary(x, row_idx, col_idx, H, W):
    """3x3 Laplacian conv (padding=1) -> clamp(min=0) -> threshold 0.1 -> {0,1}."""
    acc = 8.0 * x
    for di in (-1, 0, 1):
        for dj in (-1, 0, 1):
            if di == 0 and dj == 0:
                continue
            acc = acc - _shifted(x, di, dj, row_idx, col_idx, H, W)
    acc = jnp.maximum(acc, 0.0)
    return jnp.where(acc >= 0.1, 1.0, 0.0).astype(jnp.float32)


def _edge_loss_kernel(logits_ref, targets_ref, out_ref, exp_ref, *, C, H, W,
                      ignore_index, edge_factor):
    tgt = targets_ref[0]                               # (H, W) int32
    valid = tgt != ignore_index
    validf = valid.astype(jnp.float32)
    tgt_safe = jnp.where(valid, tgt, 0)

    # ---- pass 1: channel max / argmax / target-logit gather / logit sum ----
    m = logits_ref[0, 0]
    best_idx = jnp.zeros((H, W), jnp.float32)
    l_t = jnp.where(tgt_safe == 0, m, 0.0)             # logit of the target class
    sum_l = m
    for c in range(1, C):
        lc = logits_ref[0, c]
        better = lc > m
        m = jnp.where(better, lc, m)
        best_idx = jnp.where(better, jnp.float32(c), best_idx)
        l_t = jnp.where(tgt_safe == c, lc, l_t)
        sum_l = sum_l + lc

    # ---- pass 2: exp once per channel (kept in VMEM scratch) + denominator ----
    den = jnp.zeros((H, W), jnp.float32)
    for c in range(C):
        e = jnp.exp(logits_ref[0, c] - m)
        exp_ref[c] = e
        den = den + e
    logden = jnp.log(den)
    inv_den = 1.0 / den

    # ---- SoftCrossEntropy terms (analytic; mean over B*H*W incl. ignored,
    #      matching pytorch_toolbelt's masked_fill + .mean()) ----
    nll_map = (m + logden - l_t) * validf
    smooth_map = (jnp.float32(C) * (m + logden) - sum_l) * validf

    # ---- edge / boundary path ----
    row_idx = lax.broadcasted_iota(jnp.int32, (H, W), 0)
    col_idx = lax.broadcasted_iota(jnp.int32, (H, W), 1)
    bt = _boundary(tgt.astype(jnp.float32), row_idx, col_idx, H, W)
    bp0 = _boundary(best_idx, row_idx, col_idx, H, W)
    bp = bp0 / (bp0 + 0.01)
    # BCE-with-logits, x = bp (used as logits, as in the PyTorch module), z = bt
    bce_map = jnp.maximum(bp, 0.0) - bp * bt + jnp.log(1.0 + jnp.exp(-jnp.abs(bp)))

    combined = ((1.0 - _SMOOTH_FACTOR) * nll_map
                + (_SMOOTH_FACTOR / C) * smooth_map
                + edge_factor * bce_map)
    pix_sum = jnp.sum(combined)

    # ---- pass 3: dice per-class partial sums (reuse stored exps) ----
    w_map = inv_den * validf
    inters, cards, counts = [], [], []
    for c in range(C):
        is_c = jnp.where(tgt_safe == c, validf, 0.0)
        p_c = exp_ref[c] * w_map
        cnt = jnp.sum(is_c)
        inters.append(jnp.sum(p_c * is_c))
        counts.append(cnt)
        cards.append(jnp.sum(p_c) + cnt)

    # ---- write the per-batch partial-sum row: [pix_sum, inter_c, card_c, count_c] ----
    nacc = 1 + 3 * C
    col = lax.broadcasted_iota(jnp.int32, (1, 1, nacc), 2)
    row = jnp.zeros((1, 1, nacc), jnp.float32)
    row = jnp.where(col == 0, pix_sum, row)
    for c in range(C):
        row = jnp.where(col == 1 + c, inters[c], row)
        row = jnp.where(col == 1 + C + c, cards[c], row)
        row = jnp.where(col == 1 + 2 * C + c, counts[c], row)
    out_ref[...] = row


def edge_loss_pallas(logits, targets, *, ignore_index=_IGNORE_INDEX,
                     edge_factor=_EDGE_FACTOR):
    B, C, H, W = logits.shape
    nacc = 1 + 3 * C
    kernel = functools.partial(_edge_loss_kernel, C=C, H=H, W=W,
                               ignore_index=ignore_index, edge_factor=edge_factor)

    # 2x logits block (double-buffered) + exp scratch + targets + margin.
    block_bytes = C * H * W * 4
    need = 3 * block_bytes + 2 * H * W * 4 + (1 << 20)
    vmem_limit = int(min(64 * 1024 * 1024, max(need, 16 * 1024 * 1024)))

    parts = pl.pallas_call(
        kernel,
        out_shape=jax.ShapeDtypeStruct((B, 1, nacc), jnp.float32),
        grid_spec=pltpu.PrefetchScalarGridSpec(
            num_scalar_prefetch=0,
            grid=(B,),
            in_specs=[
                pl.BlockSpec((1, C, H, W), lambda b: (b, 0, 0, 0)),
                pl.BlockSpec((1, H, W), lambda b: (b, 0, 0)),
            ],
            out_specs=pl.BlockSpec((1, 1, nacc), lambda b: (b, 0, 0)),
            scratch_shapes=[
                pltpu.VMEM((C, H, W), jnp.float32),   # exp(l_c - m), written once, reused
            ],
        ),
        compiler_params=pltpu.CompilerParams(
            dimension_semantics=("parallel",),
            vmem_limit_bytes=vmem_limit,
        ),
    )(logits, targets.astype(jnp.int32))

    # ---- tiny final reduction in plain JAX (enables "parallel" batch axis) ----
    parts = parts.reshape(B, nacc)
    pix_sum = jnp.sum(parts[:, 0])
    inter = jnp.sum(parts[:, 1:1 + C], axis=0)
    card = jnp.sum(parts[:, 1 + C:1 + 2 * C], axis=0)
    count = jnp.sum(parts[:, 1 + 2 * C:1 + 3 * C], axis=0)

    n_pix = float(B * H * W)
    score = (2.0 * inter + _DICE_SMOOTH) / jnp.maximum(card + _DICE_SMOOTH, _DICE_EPS)
    present = (count > 0.0).astype(jnp.float32)
    dice = jnp.sum((1.0 - score) * present) / C
    return pix_sum / n_pix + dice


# ---------------------- pure-JAX reference (for sanity check) ----------------------
def _boundary_ref(x):  # x: (B, H, W) float32
    k = jnp.array([-1., -1., -1., -1., 8., -1., -1., -1., -1.],
                  jnp.float32).reshape(1, 1, 3, 3)
    y = lax.conv_general_dilated(x[:, None, :, :], k, window_strides=(1, 1),
                                 padding=((1, 1), (1, 1)),
                                 dimension_numbers=("NCHW", "OIHW", "NCHW"))[:, 0]
    y = jnp.maximum(y, 0.0)
    return jnp.where(y >= 0.1, 1.0, 0.0)


def edge_loss_ref(logits, targets):
    B, C, H, W = logits.shape
    valid = targets != _IGNORE_INDEX
    validf = valid.astype(jnp.float32)
    tgt_safe = jnp.where(valid, targets, 0)

    logp = jax.nn.log_softmax(logits, axis=1)
    onehot = jax.nn.one_hot(tgt_safe, C, axis=1, dtype=jnp.float32)
    nll = -(logp * onehot).sum(1) * validf
    smooth = -logp.sum(1) * validf
    sce = (1.0 - _SMOOTH_FACTOR) * nll.mean() + (_SMOOTH_FACTOR / C) * smooth.mean()

    probs = jax.nn.softmax(logits, axis=1)
    pm = probs * validf[:, None]
    tm = onehot * validf[:, None]
    dims = (0, 2, 3)
    inter = (pm * tm).sum(dims)
    card = (pm + tm).sum(dims)
    score = (2.0 * inter + _DICE_SMOOTH) / jnp.maximum(card + _DICE_SMOOTH, _DICE_EPS)
    present = (tm.sum(dims) > 0).astype(jnp.float32)
    dice = ((1.0 - score) * present).mean()

    bt = _boundary_ref(targets.astype(jnp.float32))
    pred = jnp.argmax(logits, axis=1).astype(jnp.float32)
    bp0 = _boundary_ref(pred)
    bp = bp0 / (bp0 + 0.01)
    bce = jnp.maximum(bp, 0.0) - bp * bt + jnp.log(1.0 + jnp.exp(-jnp.abs(bp)))
    return sce + dice + _EDGE_FACTOR * bce.mean()


if __name__ == "__main__":
    # Lane-dense W (multiple of 128) keeps the VPU fully utilized.
    B, C, H, W = 2, 4, 16, 128
    key = jax.random.PRNGKey(0)
    k1, k2, k3 = jax.random.split(key, 3)
    logits = jax.random.normal(k1, (B, C, H, W), dtype=jnp.float32)
    targets = jax.random.randint(k2, (B, H, W), 0, C, dtype=jnp.int32)
    ignore_mask = jax.random.uniform(k3, (B, H, W)) < 0.1
    targets = jnp.where(ignore_mask, _IGNORE_INDEX, targets).astype(jnp.int32)

    loss = jax.block_until_ready(edge_loss_pallas(logits, targets))
    ref = jax.block_until_ready(edge_loss_ref(logits, targets))
    np.testing.assert_allclose(np.asarray(loss), np.asarray(ref),
                               rtol=2e-4, atol=1e-5)
    print("KERNEL_OK")
</pallas_src>

<mosaic_0001>
module attributes {stable_mosaic.version = 11 : i64} {
  func.func @_edge_loss_kernel(%arg0: i32, %arg1: memref<1x4x16x128xf32, #tpu.memory_space<vmem>>, %arg2: memref<1x16x128xi32, #tpu.memory_space<vmem>>, %arg3: memref<1x1x13xf32, #tpu.memory_space<vmem>>, %arg4: memref<4x16x128xf32, #tpu.memory_space<vmem>>) attributes {dimension_semantics = [#tpu.dimension_semantics<parallel>], iteration_bounds = array<i64: 2>, scalar_prefetch = 0 : i64, scratch_operands = 1 : i64, tpu.core_type = #tpu.core_type<tc>, window_params = [{transform_indices = @transform_0, window_bounds = array<i64: 1, 4, 16, 128>}, {transform_indices = @transform_1, window_bounds = array<i64: 1, 16, 128>}, {transform_indices = @transform_2, window_bounds = array<i64: 1, 1, 13>}]} {
    %c0 = arith.constant 0 : index
    %c0_0 = arith.constant 0 : index
    %c0_1 = arith.constant 0 : index
    %0 = vector.load %arg2[%c0, %c0_0, %c0_1] : memref<1x16x128xi32, #tpu.memory_space<vmem>>, vector<1x16x128xi32>
    %1 = vector.shape_cast %0 : vector<1x16x128xi32> to vector<16x128xi32>
    %c255_i32 = arith.constant 255 : i32
    %2 = vector.broadcast %c255_i32 : i32 to vector<16x128xi32>
    %3 = arith.cmpi ne, %1, %2 : vector<16x128xi32>
    %4 = arith.extui %3 : vector<16x128xi1> to vector<16x128xi32>
    %5 = arith.sitofp %4 : vector<16x128xi32> to vector<16x128xf32>
    %c0_i32 = arith.constant 0 : i32
    %6 = vector.broadcast %c0_i32 : i32 to vector<16x128xi32>
    %7 = arith.select %3, %1, %6 : vector<16x128xi1>, vector<16x128xi32>
    %c0_2 = arith.constant 0 : index
    %c0_3 = arith.constant 0 : index
    %c0_4 = arith.constant 0 : index
    %c0_5 = arith.constant 0 : index
    %8 = vector.load %arg1[%c0_2, %c0_3, %c0_4, %c0_5] : memref<1x4x16x128xf32, #tpu.memory_space<vmem>>, vector<1x1x16x128xf32>
    %9 = vector.shape_cast %8 : vector<1x1x16x128xf32> to vector<16x128xf32>
    %cst = arith.constant 0.000000e+00 : f32
    %10 = vector.broadcast %cst : f32 to vector<16x128xf32>
    %c0_i32_6 = arith.constant 0 : i32
    %11 = vector.broadcast %c0_i32_6 : i32 to vector<16x128xi32>
    %12 = arith.cmpi eq, %7, %11 : vector<16x128xi32>
    %cst_7 = arith.constant 0.000000e+00 : f32
    %13 = vector.broadcast %cst_7 : f32 to vector<16x128xf32>
    %14 = arith.select %12, %9, %13 : vector<16x128xi1>, vector<16x128xf32>
    %c0_8 = arith.constant 0 : index
    %c1 = arith.constant 1 : index
    %c0_9 = arith.constant 0 : index
    %c0_10 = arith.constant 0 : index
    %15 = vector.load %arg1[%c0_8, %c1, %c0_9, %c0_10] : memref<1x4x16x128xf32, #tpu.memory_space<vmem>>, vector<1x1x16x128xf32>
    %16 = vector.shape_cast %15 : vector<1x1x16x128xf32> to vector<16x128xf32>
    %17 = arith.cmpf ogt, %16, %9 : vector<16x128xf32>
    %18 = arith.select %17, %16, %9 : vector<16x128xi1>, vector<16x128xf32>
    %cst_11 = arith.constant 1.000000e+00 : f32
    %19 = vector.broadcast %cst_11 : f32 to vector<16x128xf32>
    %20 = arith.select %17, %19, %10 : vector<16x128xi1>, vector<16x128xf32>
    %c1_i32 = arith.constant 1 : i32
    %21 = vector.broadcast %c1_i32 : i32 to vector<16x128xi32>
    %22 = arith.cmpi eq, %7, %21 : vector<16x128xi32>
    %23 = arith.select %22, %16, %14 : vector<16x128xi1>, vector<16x128xf32>
    %24 = arith.addf %9, %16 : vector<16x128xf32>
    %c0_12 = arith.constant 0 : index
    %c2 = arith.constant 2 : index
    %c0_13 = arith.constant 0 : index
    %c0_14 = arith.constant 0 : index
    %25 = vector.load %arg1[%c0_12, %c2, %c0_13, %c0_14] : memref<1x4x16x128xf32, #tpu.memory_space<vmem>>, vector<1x1x16x128xf32>
    %26 = vector.shape_cast %25 : vector<1x1x16x128xf32> to vector<16x128xf32>
    %27 = arith.cmpf ogt, %26, %18 : vector<16x128xf32>
    %28 = arith.select %27, %26, %18 : vector<16x128xi1>, vector<16x128xf32>
    %cst_15 = arith.constant 2.000000e+00 : f32
    %29 = vector.broadcast %cst_15 : f32 to vector<16x128xf32>
    %30 = arith.select %27, %29, %20 : vector<16x128xi1>, vector<16x128xf32>
    %c2_i32 = arith.constant 2 : i32
    %31 = vector.broadcast %c2_i32 : i32 to vector<16x128xi32>
    %32 = arith.cmpi eq, %7, %31 : vector<16x128xi32>
    %33 = arith.select %32, %26, %23 : vector<16x128xi1>, vector<16x128xf32>
    %34 = arith.addf %24, %26 : vector<16x128xf32>
    %c0_16 = arith.constant 0 : index
    %c3 = arith.constant 3 : index
    %c0_17 = arith.constant 0 : index
    %c0_18 = arith.constant 0 : index
    %35 = vector.load %arg1[%c0_16, %c3, %c0_17, %c0_18] : memref<1x4x16x128xf32, #tpu.memory_space<vmem>>, vector<1x1x16x128xf32>
    %36 = vector.shape_cast %35 : vector<1x1x16x128xf32> to vector<16x128xf32>
    %37 = arith.cmpf ogt, %36, %28 : vector<16x128xf32>
    %38 = arith.select %37, %36, %28 : vector<16x128xi1>, vector<16x128xf32>
    %cst_19 = arith.constant 3.000000e+00 : f32
    %39 = vector.broadcast %cst_19 : f32 to vector<16x128xf32>
    %40 = arith.select %37, %39, %30 : vector<16x128xi1>, vector<16x128xf32>
    %c3_i32 = arith.constant 3 : i32
    %41 = vector.broadcast %c3_i32 : i32 to vector<16x128xi32>
    %42 = arith.cmpi eq, %7, %41 : vector<16x128xi32>
    %43 = arith.select %42, %36, %33 : vector<16x128xi1>, vector<16x128xf32>
    %44 = arith.addf %34, %36 : vector<16x128xf32>
    %cst_20 = arith.constant 0.000000e+00 : f32
    %45 = vector.broadcast %cst_20 : f32 to vector<16x128xf32>
    %c0_21 = arith.constant 0 : index
    %c0_22 = arith.constant 0 : index
    %c0_23 = arith.constant 0 : index
    %c0_24 = arith.constant 0 : index
    %46 = vector.load %arg1[%c0_21, %c0_22, %c0_23, %c0_24] : memref<1x4x16x128xf32, #tpu.memory_space<vmem>>, vector<1x1x16x128xf32>
    %47 = vector.shape_cast %46 : vector<1x1x16x128xf32> to vector<16x128xf32>
    %48 = arith.subf %47, %38 : vector<16x128xf32>
    %49 = math.exp %48 : vector<16x128xf32>
    %c0_25 = arith.constant 0 : index
    %c0_26 = arith.constant 0 : index
    %c0_27 = arith.constant 0 : index
    %50 = vector.load %arg4[%c0_25, %c0_26, %c0_27] : memref<4x16x128xf32, #tpu.memory_space<vmem>>, vector<1x16x128xf32>
    %51 = vector.shape_cast %50 : vector<1x16x128xf32> to vector<16x128xf32>
    %52 = vector.shape_cast %49 : vector<16x128xf32> to vector<1x16x128xf32>
    tpu.vector_store %arg4[%c0_25, %c0_26, %c0_27], %52 {strides = array<i32>} : memref<4x16x128xf32, #tpu.memory_space<vmem>>, vector<1x16x128xf32>,
    %53 = arith.addf %45, %49 : vector<16x128xf32>
    %c0_28 = arith.constant 0 : index
    %c1_29 = arith.constant 1 : index
    %c0_30 = arith.constant 0 : index
    %c0_31 = arith.constant 0 : index
    %54 = vector.load %arg1[%c0_28, %c1_29, %c0_30, %c0_31] : memref<1x4x16x128xf32, #tpu.memory_space<vmem>>, vector<1x1x16x128xf32>
    %55 = vector.shape_cast %54 : vector<1x1x16x128xf32> to vector<16x128xf32>
    %56 = arith.subf %55, %38 : vector<16x128xf32>
    %57 = math.exp %56 : vector<16x128xf32>
    %c1_32 = arith.constant 1 : index
    %c0_33 = arith.constant 0 : index
    %c0_34 = arith.constant 0 : index
    %58 = vector.load %arg4[%c1_32, %c0_33, %c0_34] : memref<4x16x128xf32, #tpu.memory_space<vmem>>, vector<1x16x128xf32>
    %59 = vector.shape_cast %58 : vector<1x16x128xf32> to vector<16x128xf32>
    %60 = vector.shape_cast %57 : vector<16x128xf32> to vector<1x16x128xf32>
    tpu.vector_store %arg4[%c1_32, %c0_33, %c0_34], %60 {strides = array<i32>} : memref<4x16x128xf32, #tpu.memory_space<vmem>>, vector<1x16x128xf32>,
    %61 = arith.addf %53, %57 : vector<16x128xf32>
    %c0_35 = arith.constant 0 : index
    %c2_36 = arith.constant 2 : index
    %c0_37 = arith.constant 0 : index
    %c0_38 = arith.constant 0 : index
    %62 = vector.load %arg1[%c0_35, %c2_36, %c0_37, %c0_38] : memref<1x4x16x128xf32, #tpu.memory_space<vmem>>, vector<1x1x16x128xf32>
    %63 = vector.shape_cast %62 : vector<1x1x16x128xf32> to vector<16x128xf32>
    %64 = arith.subf %63, %38 : vector<16x128xf32>
    %65 = math.exp %64 : vector<16x128xf32>
    %c2_39 = arith.constant 2 : index
    %c0_40 = arith.constant 0 : index
    %c0_41 = arith.constant 0 : index
    %66 = vector.load %arg4[%c2_39, %c0_40, %c0_41] : memref<4x16x128xf32, #tpu.memory_space<vmem>>, vector<1x16x128xf32>
    %67 = vector.shape_cast %66 : vector<1x16x128xf32> to vector<16x128xf32>
    %68 = vector.shape_cast %65 : vector<16x128xf32> to vector<1x16x128xf32>
    tpu.vector_store %arg4[%c2_39, %c0_40, %c0_41], %68 {strides = array<i32>} : memref<4x16x128xf32, #tpu.memory_space<vmem>>, vector<1x16x128xf32>,
    %69 = arith.addf %61, %65 : vector<16x128xf32>
    %c0_42 = arith.constant 0 : index
    %c3_43 = arith.constant 3 : index
    %c0_44 = arith.constant 0 : index
    %c0_45 = arith.constant 0 : index
    %70 = vector.load %arg1[%c0_42, %c3_43, %c0_44, %c0_45] : memref<1x4x16x128xf32, #tpu.memory_space<vmem>>, vector<1x1x16x128xf32>
    %71 = vector.shape_cast %70 : vector<1x1x16x128xf32> to vector<16x128xf32>
    %72 = arith.subf %71, %38 : vector<16x128xf32>
    %73 = math.exp %72 : vector<16x128xf32>
    %c3_46 = arith.constant 3 : index
    %c0_47 = arith.constant 0 : index
    %c0_48 = arith.constant 0 : index
    %74 = vector.load %arg4[%c3_46, %c0_47, %c0_48] : memref<4x16x128xf32, #tpu.memory_space<vmem>>, vector<1x16x128xf32>
    %75 = vector.shape_cast %74 : vector<1x16x128xf32> to vector<16x128xf32>
    %76 = vector.shape_cast %73 : vector<16x128xf32> to vector<1x16x128xf32>
    tpu.vector_store %arg4[%c3_46, %c0_47, %c0_48], %76 {strides = array<i32>} : memref<4x16x128xf32, #tpu.memory_space<vmem>>, vector<1x16x128xf32>,
    %77 = arith.addf %69, %73 : vector<16x128xf32>
    %78 = math.log %77 : vector<16x128xf32>
    %cst_49 = arith.constant 1.000000e+00 : f32
    %79 = vector.broadcast %cst_49 : f32 to vector<16x128xf32>
    %80 = arith.divf %79, %77 : vector<16x128xf32>
    %81 = arith.addf %38, %78 : vector<16x128xf32>
    %82 = arith.subf %81, %43 : vector<16x128xf32>
    %83 = arith.mulf %82, %5 : vector<16x128xf32>
    %84 = arith.addf %38, %78 : vector<16x128xf32>
    %cst_50 = arith.constant 4.000000e+00 : f32
    %85 = vector.broadcast %cst_50 : f32 to vector<16x128xf32>
    %86 = arith.mulf %85, %84 : vector<16x128xf32>
    %87 = arith.subf %86, %44 : vector<16x128xf32>
    %88 = arith.mulf %87, %5 : vector<16x128xf32>
    %89 = tpu.iota {dimensions = array<i32: 0>} : vector<16x128xi32>
    %90 = tpu.iota {dimensions = array<i32: 1>} : vector<16x128xi32>
    %91 = arith.sitofp %1 : vector<16x128xi32> to vector<16x128xf32>
    %cst_51 = arith.constant 8.000000e+00 : f32
    %92 = vector.broadcast %cst_51 : f32 to vector<16x128xf32>
    %93 = arith.mulf %92, %91 : vector<16x128xf32>
    %c1_i32_52 = arith.constant 1 : i32
    %94 = tpu.dynamic_rotate %91 by %c1_i32_52 dim 0 : vector<16x128xf32>, i32 -> vector<16x128xf32>
    %c1_i32_53 = arith.constant 1 : i32
    %95 = vector.broadcast %c1_i32_53 : i32 to vector<16x128xi32>
    %96 = arith.cmpi sge, %89, %95 : vector<16x128xi32>
    %cst_54 = arith.constant 0.000000e+00 : f32
    %97 = vector.broadcast %cst_54 : f32 to vector<16x128xf32>
    %98 = arith.select %96, %94, %97 : vector<16x128xi1>, vector<16x128xf32>
    %c1_i32_55 = arith.constant 1 : i32
    %99 = tpu.dynamic_rotate %98 by %c1_i32_55 dim 1 : vector<16x128xf32>, i32 -> vector<16x128xf32>
    %c1_i32_56 = arith.constant 1 : i32
    %100 = vector.broadcast %c1_i32_56 : i32 to vector<16x128xi32>
    %101 = arith.cmpi sge, %90, %100 : vector<16x128xi32>
    %cst_57 = arith.constant 0.000000e+00 : f32
    %102 = vector.broadcast %cst_57 : f32 to vector<16x128xf32>
    %103 = arith.select %101, %99, %102 : vector<16x128xi1>, vector<16x128xf32>
    %104 = arith.subf %93, %103 : vector<16x128xf32>
    %c1_i32_58 = arith.constant 1 : i32
    %105 = tpu.dynamic_rotate %91 by %c1_i32_58 dim 0 : vector<16x128xf32>, i32 -> vector<16x128xf32>
    %c1_i32_59 = arith.constant 1 : i32
    %106 = vector.broadcast %c1_i32_59 : i32 to vector<16x128xi32>
    %107 = arith.cmpi sge, %89, %106 : vector<16x128xi32>
    %cst_60 = arith.constant 0.000000e+00 : f32
    %108 = vector.broadcast %cst_60 : f32 to vector<16x128xf32>
    %109 = arith.select %107, %105, %108 : vector<16x128xi1>, vector<16x128xf32>
    %110 = arith.subf %104, %109 : vector<16x128xf32>
    %c1_i32_61 = arith.constant 1 : i32
    %111 = tpu.dynamic_rotate %91 by %c1_i32_61 dim 0 : vector<16x128xf32>, i32 -> vector<16x128xf32>
    %c1_i32_62 = arith.constant 1 : i32
    %112 = vector.broadcast %c1_i32_62 : i32 to vector<16x128xi32>
    %113 = arith.cmpi sge, %89, %112 : vector<16x128xi32>
    %cst_63 = arith.constant 0.000000e+00 : f32
    %114 = vector.broadcast %cst_63 : f32 to vector<16x128xf32>
    %115 = arith.select %113, %111, %114 : vector<16x128xi1>, vector<16x128xf32>
    %c127_i32 = arith.constant 127 : i32
    %116 = tpu.dynamic_rotate %115 by %c127_i32 dim 1 : vector<16x128xf32>, i32 -> vector<16x128xf32>
    %c127_i32_64 = arith.constant 127 : i32
    %117 = vector.broadcast %c127_i32_64 : i32 to vector<16x128xi32>
    %118 = arith.cmpi slt, %90, %117 : vector<16x128xi32>
    %cst_65 = arith.constant 0.000000e+00 : f32
    %119 = vector.broadcast %cst_65 : f32 to vector<16x128xf32>
    %120 = arith.select %118, %116, %119 : vector<16x128xi1>, vector<16x128xf32>
    %121 = arith.subf %110, %120 : vector<16x128xf32>
    %c1_i32_66 = arith.constant 1 : i32
    %122 = tpu.dynamic_rotate %91 by %c1_i32_66 dim 1 : vector<16x128xf32>, i32 -> vector<16x128xf32>
    %c1_i32_67 = arith.constant 1 : i32
    %123 = vector.broadcast %c1_i32_67 : i32 to vector<16x128xi32>
    %124 = arith.cmpi sge, %90, %123 : vector<16x128xi32>
    %cst_68 = arith.constant 0.000000e+00 : f32
    %125 = vector.broadcast %cst_68 : f32 to vector<16x128xf32>
    %126 = arith.select %124, %122, %125 : vector<16x128xi1>, vector<16x128xf32>
    %127 = arith.subf %121, %126 : vector<16x128xf32>
    %c127_i32_69 = arith.constant 127 : i32
    %128 = tpu.dynamic_rotate %91 by %c127_i32_69 dim 1 : vector<16x128xf32>, i32 -> vector<16x128xf32>
    %c127_i32_70 = arith.constant 127 : i32
    %129 = vector.broadcast %c127_i32_70 : i32 to vector<16x128xi32>
    %130 = arith.cmpi slt, %90, %129 : vector<16x128xi32>
    %cst_71 = arith.constant 0.000000e+00 : f32
    %131 = vector.broadcast %cst_71 : f32 to vector<16x128xf32>
    %132 = arith.select %130, %128, %131 : vector<16x128xi1>, vector<16x128xf32>
    %133 = arith.subf %127, %132 : vector<16x128xf32>
    %c15_i32 = arith.constant 15 : i32
    %134 = tpu.dynamic_rotate %91 by %c15_i32 dim 0 : vector<16x128xf32>, i32 -> vector<16x128xf32>
    %c15_i32_72 = arith.constant 15 : i32
    %135 = vector.broadcast %c15_i32_72 : i32 to vector<16x128xi32>
    %136 = arith.cmpi slt, %89, %135 : vector<16x128xi32>
    %cst_73 = arith.constant 0.000000e+00 : f32
    %137 = vector.broadcast %cst_73 : f32 to vector<16x128xf32>
    %138 = arith.select %136, %134, %137 : vector<16x128xi1>, vector<16x128xf32>
    %c1_i32_74 = arith.constant 1 : i32
    %139 = tpu.dynamic_rotate %138 by %c1_i32_74 dim 1 : vector<16x128xf32>, i32 -> vector<16x128xf32>
    %c1_i32_75 = arith.constant 1 : i32
    %140 = vector.broadcast %c1_i32_75 : i32 to vector<16x128xi32>
    %141 = arith.cmpi sge, %90, %140 : vector<16x128xi32>
    %cst_76 = arith.constant 0.000000e+00 : f32
    %142 = vector.broadcast %cst_76 : f32 to vector<16x128xf32>
    %143 = arith.select %141, %139, %142 : vector<16x128xi1>, vector<16x128xf32>
    %144 = arith.subf %133, %143 : vector<16x128xf32>
    %c15_i32_77 = arith.constant 15 : i32
    %145 = tpu.dynamic_rotate %91 by %c15_i32_77 dim 0 : vector<16x128xf32>, i32 -> vector<16x128xf32>
    %c15_i32_78 = arith.constant 15 : i32
    %146 = vector.broadcast %c15_i32_78 : i32 to vector<16x128xi32>
    %147 = arith.cmpi slt, %89, %146 : vector<16x128xi32>
    %cst_79 = arith.constant 0.000000e+00 : f32
    %148 = vector.broadcast %cst_79 : f32 to vector<16x128xf32>
    %149 = arith.select %147, %145, %148 : vector<16x128xi1>, vector<16x128xf32>
    %150 = arith.subf %144, %149 : vector<16x128xf32>
    %c15_i32_80 = arith.constant 15 : i32
    %151 = tpu.dynamic_rotate %91 by %c15_i32_80 dim 0 : vector<16x128xf32>, i32 -> vector<16x128xf32>
    %c15_i32_81 = arith.constant 15 : i32
    %152 = vector.broadcast %c15_i32_81 : i32 to vector<16x128xi32>
    %153 = arith.cmpi slt, %89, %152 : vector<16x128xi32>
    %cst_82 = arith.constant 0.000000e+00 : f32
    %154 = vector.broadcast %cst_82 : f32 to vector<16x128xf32>
    %155 = arith.select %153, %151, %154 : vector<16x128xi1>, vector<16x128xf32>
    %c127_i32_83 = arith.constant 127 : i32
    %156 = tpu.dynamic_rotate %155 by %c127_i32_83 dim 1 : vector<16x128xf32>, i32 -> vector<16x128xf32>
    %c127_i32_84 = arith.constant 127 : i32
    %157 = vector.broadcast %c127_i32_84 : i32 to vector<16x128xi32>
    %158 = arith.cmpi slt, %90, %157 : vector<16x128xi32>
    %cst_85 = arith.constant 0.000000e+00 : f32
    %159 = vector.broadcast %cst_85 : f32 to vector<16x128xf32>
    %160 = arith.select %158, %156, %159 : vector<16x128xi1>, vector<16x128xf32>
    %161 = arith.subf %150, %160 : vector<16x128xf32>
    %cst_86 = arith.constant 0.000000e+00 : f32
    %162 = vector.broadcast %cst_86 : f32 to vector<16x128xf32>
    %163 = arith.maximumf %161, %162 : vector<16x128xf32>
    %cst_87 = arith.constant 1.000000e-01 : f32
    %164 = vector.broadcast %cst_87 : f32 to vector<16x128xf32>
    %165 = arith.cmpf oge, %163, %164 : vector<16x128xf32>
    %cst_88 = arith.constant 1.000000e+00 : f32
    %cst_89 = arith.constant 0.000000e+00 : f32
    %166 = vector.broadcast %cst_88 : f32 to vector<16x128xf32>
    %167 = vector.broadcast %cst_89 : f32 to vector<16x128xf32>
    %168 = arith.select %165, %166, %167 : vector<16x128xi1>, vector<16x128xf32>
    %cst_90 = arith.constant 8.000000e+00 : f32
    %169 = vector.broadcast %cst_90 : f32 to vector<16x128xf32>
    %170 = arith.mulf %169, %40 : vector<16x128xf32>
    %c1_i32_91 = arith.constant 1 : i32
    %171 = tpu.dynamic_rotate %40 by %c1_i32_91 dim 0 : vector<16x128xf32>, i32 -> vector<16x128xf32>
    %c1_i32_92 = arith.constant 1 : i32
    %172 = vector.broadcast %c1_i32_92 : i32 to vector<16x128xi32>
    %173 = arith.cmpi sge, %89, %172 : vector<16x128xi32>
    %cst_93 = arith.constant 0.000000e+00 : f32
    %174 = vector.broadcast %cst_93 : f32 to vector<16x128xf32>
    %175 = arith.select %173, %171, %174 : vector<16x128xi1>, vector<16x128xf32>
    %c1_i32_94 = arith.constant 1 : i32
    %176 = tpu.dynamic_rotate %175 by %c1_i32_94 dim 1 : vector<16x128xf32>, i32 -> vector<16x128xf32>
    %c1_i32_95 = arith.constant 1 : i32
    %177 = vector.broadcast %c1_i32_95 : i32 to vector<16x128xi32>
    %178 = arith.cmpi sge, %90, %177 : vector<16x128xi32>
    %cst_96 = arith.constant 0.000000e+00 : f32
    %179 = vector.broadcast %cst_96 : f32 to vector<16x128xf32>
    %180 = arith.select %178, %176, %179 : vector<16x128xi1>, vector<16x128xf32>
    %181 = arith.subf %170, %180 : vector<16x128xf32>
    %c1_i32_97 = arith.constant 1 : i32
    %182 = tpu.dynamic_rotate %40 by %c1_i32_97 dim 0 : vector<16x128xf32>, i32 -> vector<16x128xf32>
    %c1_i32_98 = arith.constant 1 : i32
    %183 = vector.broadcast %c1_i32_98 : i32 to vector<16x128xi32>
    %184 = arith.cmpi sge, %89, %183 : vector<16x128xi32>
    %cst_99 = arith.constant 0.000000e+00 : f32
    %185 = vector.broadcast %cst_99 : f32 to vector<16x128xf32>
    %186 = arith.select %184, %182, %185 : vector<16x128xi1>, vector<16x128xf32>
    %187 = arith.subf %181, %186 : vector<16x128xf32>
    %c1_i32_100 = arith.constant 1 : i32
    %188 = tpu.dynamic_rotate %40 by %c1_i32_100 dim 0 : vector<16x128xf32>, i32 -> vector<16x128xf32>
    %c1_i32_101 = arith.constant 1 : i32
    %189 = vector.broadcast %c1_i32_101 : i32 to vector<16x128xi32>
    %190 = arith.cmpi sge, %89, %189 : vector<16x128xi32>
    %cst_102 = arith.constant 0.000000e+00 : f32
    %191 = vector.broadcast %cst_102 : f32 to vector<16x128xf32>
    %192 = arith.select %190, %188, %191 : vector<16x128xi1>, vector<16x128xf32>
    %c127_i32_103 = arith.constant 127 : i32
    %193 = tpu.dynamic_rotate %192 by %c127_i32_103 dim 1 : vector<16x128xf32>, i32 -> vector<16x128xf32>
    %c127_i32_104 = arith.constant 127 : i32
    %194 = vector.broadcast %c127_i32_104 : i32 to vector<16x128xi32>
    %195 = arith.cmpi slt, %90, %194 : vector<16x128xi32>
    %cst_105 = arith.constant 0.000000e+00 : f32
    %196 = vector.broadcast %cst_105 : f32 to vector<16x128xf32>
    %197 = arith.select %195, %193, %196 : vector<16x128xi1>, vector<16x128xf32>
    %198 = arith.subf %187, %197 : vector<16x128xf32>
    %c1_i32_106 = arith.constant 1 : i32
    %199 = tpu.dynamic_rotate %40 by %c1_i32_106 dim 1 : vector<16x128xf32>, i32 -> vector<16x128xf32>
    %c1_i32_107 = arith.constant 1 : i32
    %200 = vector.broadcast %c1_i32_107 : i32 to vector<16x128xi32>
    %201 = arith.cmpi sge, %90, %200 : vector<16x128xi32>
    %cst_108 = arith.constant 0.000000e+00 : f32
    %202 = vector.broadcast %cst_108 : f32 to vector<16x128xf32>
    %203 = arith.select %201, %199, %202 : vector<16x128xi1>, vector<16x128xf32>
    %204 = arith.subf %198, %203 : vector<16x128xf32>
    %c127_i32_109 = arith.constant 127 : i32
    %205 = tpu.dynamic_rotate %40 by %c127_i32_109 dim 1 : vector<16x128xf32>, i32 -> vector<16x128xf32>
    %c127_i32_110 = arith.constant 127 : i32
    %206 = vector.broadcast %c127_i32_110 : i32 to vector<16x128xi32>
    %207 = arith.cmpi slt, %90, %206 : vector<16x128xi32>
    %cst_111 = arith.constant 0.000000e+00 : f32
    %208 = vector.broadcast %cst_111 : f32 to vector<16x128xf32>
    %209 = arith.select %207, %205, %208 : vector<16x128xi1>, vector<16x128xf32>
    %210 = arith.subf %204, %209 : vector<16x128xf32>
    %c15_i32_112 = arith.constant 15 : i32
    %211 = tpu.dynamic_rotate %40 by %c15_i32_112 dim 0 : vector<16x128xf32>, i32 -> vector<16x128xf32>
    %c15_i32_113 = arith.constant 15 : i32
    %212 = vector.broadcast %c15_i32_113 : i32 to vector<16x128xi32>
    %213 = arith.cmpi slt, %89, %212 : vector<16x128xi32>
    %cst_114 = arith.constant 0.000000e+00 : f32
    %214 = vector.broadcast %cst_114 : f32 to vector<16x128xf32>
    %215 = arith.select %213, %211, %214 : vector<16x128xi1>, vector<16x128xf32>
    %c1_i32_115 = arith.constant 1 : i32
    %216 = tpu.dynamic_rotate %215 by %c1_i32_115 dim 1 : vector<16x128xf32>, i32 -> vector<16x128xf32>
    %c1_i32_116 = arith.constant 1 : i32
    %217 = vector.broadcast %c1_i32_116 : i32 to vector<16x128xi32>
    %218 = arith.cmpi sge, %90, %217 : vector<16x128xi32>
    %cst_117 = arith.constant 0.000000e+00 : f32
    %219 = vector.broadcast %cst_117 : f32 to vector<16x128xf32>
    %220 = arith.select %218, %216, %219 : vector<16x128xi1>, vector<16x128xf32>
    %221 = arith.subf %210, %220 : vector<16x128xf32>
    %c15_i32_118 = arith.constant 15 : i32
    %222 = tpu.dynamic_rotate %40 by %c15_i32_118 dim 0 : vector<16x128xf32>, i32 -> vector<16x128xf32>
    %c15_i32_119 = arith.constant 15 : i32
    %223 = vector.broadcast %c15_i32_119 : i32 to vector<16x128xi32>
    %224 = arith.cmpi slt, %89, %223 : vector<16x128xi32>
    %cst_120 = arith.constant 0.000000e+00 : f32
    %225 = vector.broadcast %cst_120 : f32 to vector<16x128xf32>
    %226 = arith.select %224, %222, %225 : vector<16x128xi1>, vector<16x128xf32>
    %227 = arith.subf %221, %226 : vector<16x128xf32>
    %c15_i32_121 = arith.constant 15 : i32
    %228 = tpu.dynamic_rotate %40 by %c15_i32_121 dim 0 : vector<16x128xf32>, i32 -> vector<16x128xf32>
    %c15_i32_122 = arith.constant 15 : i32
    %229 = vector.broadcast %c15_i32_122 : i32 to vector<16x128xi32>
    %230 = arith.cmpi slt, %89, %229 : vector<16x128xi32>
    %cst_123 = arith.constant 0.000000e+00 : f32
    %231 = vector.broadcast %cst_123 : f32 to vector<16x128xf32>
    %232 = arith.select %230, %228, %231 : vector<16x128xi1>, vector<16x128xf32>
    %c127_i32_124 = arith.constant 127 : i32
    %233 = tpu.dynamic_rotate %232 by %c127_i32_124 dim 1 : vector<16x128xf32>, i32 -> vector<16x128xf32>
    %c127_i32_125 = arith.constant 127 : i32
    %234 = vector.broadcast %c127_i32_125 : i32 to vector<16x128xi32>
    %235 = arith.cmpi slt, %90, %234 : vector<16x128xi32>
    %cst_126 = arith.constant 0.000000e+00 : f32
    %236 = vector.broadcast %cst_126 : f32 to vector<16x128xf32>
    %237 = arith.select %235, %233, %236 : vector<16x128xi1>, vector<16x128xf32>
    %238 = arith.subf %227, %237 : vector<16x128xf32>
    %cst_127 = arith.constant 0.000000e+00 : f32
    %239 = vector.broadcast %cst_127 : f32 to vector<16x128xf32>
    %240 = arith.maximumf %238, %239 : vector<16x128xf32>
    %cst_128 = arith.constant 1.000000e-01 : f32
    %241 = vector.broadcast %cst_128 : f32 to vector<16x128xf32>
    %242 = arith.cmpf oge, %240, %241 : vector<16x128xf32>
    %cst_129 = arith.constant 1.000000e+00 : f32
    %cst_130 = arith.constant 0.000000e+00 : f32
    %243 = vector.broadcast %cst_129 : f32 to vector<16x128xf32>
    %244 = vector.broadcast %cst_130 : f32 to vector<16x128xf32>
    %245 = arith.select %242, %243, %244 : vector<16x128xi1>, vector<16x128xf32>
    %cst_131 = arith.constant 0.00999999977 : f32
    %246 = vector.broadcast %cst_131 : f32 to vector<16x128xf32>
    %247 = arith.addf %245, %246 : vector<16x128xf32>
    %248 = arith.divf %245, %247 : vector<16x128xf32>
    %cst_132 = arith.constant 0.000000e+00 : f32
    %249 = vector.broadcast %cst_132 : f32 to vector<16x128xf32>
    %250 = arith.maximumf %248, %249 : vector<16x128xf32>
    %251 = arith.mulf %248, %168 : vector<16x128xf32>
    %252 = arith.subf %250, %251 : vector<16x128xf32>
    %253 = math.absf %248 : vector<16x128xf32>
    %cst_133 = arith.constant 0.000000e+00 : f32
    %254 = vector.broadcast %cst_133 : f32 to vector<16x128xf32>
    %255 = arith.subf %254, %253 : vector<16x128xf32>
    %256 = math.exp %255 : vector<16x128xf32>
    %cst_134 = arith.constant 1.000000e+00 : f32
    %257 = vector.broadcast %cst_134 : f32 to vector<16x128xf32>
    %258 = arith.addf %257, %256 : vector<16x128xf32>
    %259 = math.log %258 : vector<16x128xf32>
    %260 = arith.addf %252, %259 : vector<16x128xf32>
    %cst_135 = arith.constant 0.949999988 : f32
    %261 = vector.broadcast %cst_135 : f32 to vector<16x128xf32>
    %262 = arith.mulf %261, %83 : vector<16x128xf32>
    %cst_136 = arith.constant 1.250000e-02 : f32
    %263 = vector.broadcast %cst_136 : f32 to vector<16x128xf32>
    %264 = arith.mulf %263, %88 : vector<16x128xf32>
    %265 = arith.addf %262, %264 : vector<16x128xf32>
    %cst_137 = arith.constant 1.000000e+00 : f32
    %266 = vector.broadcast %cst_137 : f32 to vector<16x128xf32>
    %267 = arith.mulf %266, %260 : vector<16x128xf32>
    %268 = arith.addf %265, %267 : vector<16x128xf32>
    %269 = vector.shape_cast %268 : vector<16x128xf32> to vector<1x16x128xf32>
    %cst_138 = arith.constant dense<0.000000e+00> : vector<1xf32>
    %270 = vector.multi_reduction <add>, %269, %cst_138 [1, 2] : vector<1x16x128xf32> to vector<1xf32>
    %271 = vector.shape_cast %270 : vector<1xf32> to vector<1x1x1xf32>
    %272 = vector.extract %271[0, 0, 0] : f32 from vector<1x1x1xf32>
    %273 = arith.mulf %80, %5 : vector<16x128xf32>
    %c0_i32_139 = arith.constant 0 : i32
    %274 = vector.broadcast %c0_i32_139 : i32 to vector<16x128xi32>
    %275 = arith.cmpi eq, %7, %274 : vector<16x128xi32>
    %cst_140 = arith.constant 0.000000e+00 : f32
    %276 = vector.broadcast %cst_140 : f32 to vector<16x128xf32>
    %277 = arith.select %275, %5, %276 : vector<16x128xi1>, vector<16x128xf32>
    %c0_141 = arith.constant 0 : index
    %c0_142 = arith.constant 0 : index
    %c0_143 = arith.constant 0 : index
    %278 = vector.load %arg4[%c0_141, %c0_142, %c0_143] : memref<4x16x128xf32, #tpu.memory_space<vmem>>, vector<1x16x128xf32>
    %279 = vector.shape_cast %278 : vector<1x16x128xf32> to vector<16x128xf32>
    %280 = arith.mulf %279, %273 : vector<16x128xf32>
    %281 = vector.shape_cast %277 : vector<16x128xf32> to vector<1x16x128xf32>
    %cst_144 = arith.constant dense<0.000000e+00> : vector<1xf32>
    %282 = vector.multi_reduction <add>, %281, %cst_144 [1, 2] : vector<1x16x128xf32> to vector<1xf32>
    %283 = vector.shape_cast %282 : vector<1xf32> to vector<1x1x1xf32>
    %284 = vector.extract %283[0, 0, 0] : f32 from vector<1x1x1xf32>
    %285 = arith.mulf %280, %277 : vector<16x128xf32>
    %286 = vector.shape_cast %285 : vector<16x128xf32> to vector<1x16x128xf32>
    %cst_145 = arith.constant dense<0.000000e+00> : vector<1xf32>
    %287 = vector.multi_reduction <add>, %286, %cst_145 [1, 2] : vector<1x16x128xf32> to vector<1xf32>
    %288 = vector.shape_cast %287 : vector<1xf32> to vector<1x1x1xf32>
    %289 = vector.extract %288[0, 0, 0] : f32 from vector<1x1x1xf32>
    %290 = vector.shape_cast %280 : vector<16x128xf32> to vector<1x16x128xf32>
    %cst_146 = arith.constant dense<0.000000e+00> : vector<1xf32>
    %291 = vector.multi_reduction <add>, %290, %cst_146 [1, 2] : vector<1x16x128xf32> to vector<1xf32>
    %292 = vector.shape_cast %291 : vector<1xf32> to vector<1x1x1xf32>
    %293 = vector.extract %292[0, 0, 0] : f32 from vector<1x1x1xf32>
    %294 = arith.addf %293, %284 : f32
    %c1_i32_147 = arith.constant 1 : i32
    %295 = vector.broadcast %c1_i32_147 : i32 to vector<16x128xi32>
    %296 = arith.cmpi eq, %7, %295 : vector<16x128xi32>
    %cst_148 = arith.constant 0.000000e+00 : f32
    %297 = vector.broadcast %cst_148 : f32 to vector<16x128xf32>
    %298 = arith.select %296, %5, %297 : vector<16x128xi1>, vector<16x128xf32>
    %c1_149 = arith.constant 1 : index
    %c0_150 = arith.constant 0 : index
    %c0_151 = arith.constant 0 : index
    %299 = vector.load %arg4[%c1_149, %c0_150, %c0_151] : memref<4x16x128xf32, #tpu.memory_space<vmem>>, vector<1x16x128xf32>
    %300 = vector.shape_cast %299 : vector<1x16x128xf32> to vector<16x128xf32>
    %301 = arith.mulf %300, %273 : vector<16x128xf32>
    %302 = vector.shape_cast %298 : vector<16x128xf32> to vector<1x16x128xf32>
    %cst_152 = arith.constant dense<0.000000e+00> : vector<1xf32>
    %303 = vector.multi_reduction <add>, %302, %cst_152 [1, 2] : vector<1x16x128xf32> to vector<1xf32>
    %304 = vector.shape_cast %303 : vector<1xf32> to vector<1x1x1xf32>
    %305 = vector.extract %304[0, 0, 0] : f32 from vector<1x1x1xf32>
    %306 = arith.mulf %301, %298 : vector<16x128xf32>
    %307 = vector.shape_cast %306 : vector<16x128xf32> to vector<1x16x128xf32>
    %cst_153 = arith.constant dense<0.000000e+00> : vector<1xf32>
    %308 = vector.multi_reduction <add>, %307, %cst_153 [1, 2] : vector<1x16x128xf32> to vector<1xf32>
    %309 = vector.shape_cast %308 : vector<1xf32> to vector<1x1x1xf32>
    %310 = vector.extract %309[0, 0, 0] : f32 from vector<1x1x1xf32>
    %311 = vector.shape_cast %301 : vector<16x128xf32> to vector<1x16x128xf32>
    %cst_154 = arith.constant dense<0.000000e+00> : vector<1xf32>
    %312 = vector.multi_reduction <add>, %311, %cst_154 [1, 2] : vector<1x16x128xf32> to vector<1xf32>
    %313 = vector.shape_cast %312 : vector<1xf32> to vector<1x1x1xf32>
    %314 = vector.extract %313[0, 0, 0] : f32 from vector<1x1x1xf32>
    %315 = arith.addf %314, %305 : f32
    %c2_i32_155 = arith.constant 2 : i32
    %316 = vector.broadcast %c2_i32_155 : i32 to vector<16x128xi32>
    %317 = arith.cmpi eq, %7, %316 : vector<16x128xi32>
    %cst_156 = arith.constant 0.000000e+00 : f32
    %318 = vector.broadcast %cst_156 : f32 to vector<16x128xf32>
    %319 = arith.select %317, %5, %318 : vector<16x128xi1>, vector<16x128xf32>
    %c2_157 = arith.constant 2 : index
    %c0_158 = arith.constant 0 : index
    %c0_159 = arith.constant 0 : index
    %320 = vector.load %arg4[%c2_157, %c0_158, %c0_159] : memref<4x16x128xf32, #tpu.memory_space<vmem>>, vector<1x16x128xf32>
    %321 = vector.shape_cast %320 : vector<1x16x128xf32> to vector<16x128xf32>
    %322 = arith.mulf %321, %273 : vector<16x128xf32>
    %323 = vector.shape_cast %319 : vector<16x128xf32> to vector<1x16x128xf32>
    %cst_160 = arith.constant dense<0.000000e+00> : vector<1xf32>
    %324 = vector.multi_reduction <add>, %323, %cst_160 [1, 2] : vector<1x16x128xf32> to vector<1xf32>
    %325 = vector.shape_cast %324 : vector<1xf32> to vector<1x1x1xf32>
    %326 = vector.extract %325[0, 0, 0] : f32 from vector<1x1x1xf32>
    %327 = arith.mulf %322, %319 : vector<16x128xf32>
    %328 = vector.shape_cast %327 : vector<16x128xf32> to vector<1x16x128xf32>
    %cst_161 = arith.constant dense<0.000000e+00> : vector<1xf32>
    %329 = vector.multi_reduction <add>, %328, %cst_161 [1, 2] : vector<1x16x128xf32> to vector<1xf32>
    %330 = vector.shape_cast %329 : vector<1xf32> to vector<1x1x1xf32>
    %331 = vector.extract %330[0, 0, 0] : f32 from vector<1x1x1xf32>
    %332 = vector.shape_cast %322 : vector<16x128xf32> to vector<1x16x128xf32>
    %cst_162 = arith.constant dense<0.000000e+00> : vector<1xf32>
    %333 = vector.multi_reduction <add>, %332, %cst_162 [1, 2] : vector<1x16x128xf32> to vector<1xf32>
    %334 = vector.shape_cast %333 : vector<1xf32> to vector<1x1x1xf32>
    %335 = vector.extract %334[0, 0, 0] : f32 from vector<1x1x1xf32>
    %336 = arith.addf %335, %326 : f32
    %c3_i32_163 = arith.constant 3 : i32
    %337 = vector.broadcast %c3_i32_163 : i32 to vector<16x128xi32>
    %338 = arith.cmpi eq, %7, %337 : vector<16x128xi32>
    %cst_164 = arith.constant 0.000000e+00 : f32
    %339 = vector.broadcast %cst_164 : f32 to vector<16x128xf32>
    %340 = arith.select %338, %5, %339 : vector<16x128xi1>, vector<16x128xf32>
    %c3_165 = arith.constant 3 : index
    %c0_166 = arith.constant 0 : index
    %c0_167 = arith.constant 0 : index
    %341 = vector.load %arg4[%c3_165, %c0_166, %c0_167] : memref<4x16x128xf32, #tpu.memory_space<vmem>>, vector<1x16x128xf32>
    %342 = vector.shape_cast %341 : vector<1x16x128xf32> to vector<16x128xf32>
    %343 = arith.mulf %342, %273 : vector<16x128xf32>
    %344 = vector.shape_cast %340 : vector<16x128xf32> to vector<1x16x128xf32>
    %cst_168 = arith.constant dense<0.000000e+00> : vector<1xf32>
    %345 = vector.multi_reduction <add>, %344, %cst_168 [1, 2] : vector<1x16x128xf32> to vector<1xf32>
    %346 = vector.shape_cast %345 : vector<1xf32> to vector<1x1x1xf32>
    %347 = vector.extract %346[0, 0, 0] : f32 from vector<1x1x1xf32>
    %348 = arith.mulf %343, %340 : vector<16x128xf32>
    %349 = vector.shape_cast %348 : vector<16x128xf32> to vector<1x16x128xf32>
    %cst_169 = arith.constant dense<0.000000e+00> : vector<1xf32>
    %350 = vector.multi_reduction <add>, %349, %cst_169 [1, 2] : vector<1x16x128xf32> to vector<1xf32>
    %351 = vector.shape_cast %350 : vector<1xf32> to vector<1x1x1xf32>
    %352 = vector.extract %351[0, 0, 0] : f32 from vector<1x1x1xf32>
    %353 = vector.shape_cast %343 : vector<16x128xf32> to vector<1x16x128xf32>
    %cst_170 = arith.constant dense<0.000000e+00> : vector<1xf32>
    %354 = vector.multi_reduction <add>, %353, %cst_170 [1, 2] : vector<1x16x128xf32> to vector<1xf32>
    %355 = vector.shape_cast %354 : vector<1xf32> to vector<1x1x1xf32>
    %356 = vector.extract %355[0, 0, 0] : f32 from vector<1x1x1xf32>
    %357 = arith.addf %356, %347 : f32
    %358 = tpu.iota {dimensions = array<i32: 2>} : vector<1x1x13xi32>
    %cst_171 = arith.constant 0.000000e+00 : f32
    %359 = vector.broadcast %cst_171 : f32 to vector<1x1x13xf32>
    %c0_i32_172 = arith.constant 0 : i32
    %360 = vector.broadcast %c0_i32_172 : i32 to vector<1x1x13xi32>
    %361 = arith.cmpi eq, %358, %360 : vector<1x1x13xi32>
    %362 = vector.broadcast %272 : f32 to vector<1x1x13xf32>
    %363 = arith.select %361, %362, %359 : vector<1x1x13xi1>, vector<1x1x13xf32>
    %c1_i32_173 = arith.constant 1 : i32
    %364 = vector.broadcast %c1_i32_173 : i32 to vector<1x1x13xi32>
    %365 = arith.cmpi eq, %358, %364 : vector<1x1x13xi32>
    %366 = vector.broadcast %289 : f32 to vector<1x1x13xf32>
    %367 = arith.select %365, %366, %363 : vector<1x1x13xi1>, vector<1x1x13xf32>
    %c5_i32 = arith.constant 5 : i32
    %368 = vector.broadcast %c5_i32 : i32 to vector<1x1x13xi32>
    %369 = arith.cmpi eq, %358, %368 : vector<1x1x13xi32>
    %370 = vector.broadcast %294 : f32 to vector<1x1x13xf32>
    %371 = arith.select %369, %370, %367 : vector<1x1x13xi1>, vector<1x1x13xf32>
    %c9_i32 = arith.constant 9 : i32
    %372 = vector.broadcast %c9_i32 : i32 to vector<1x1x13xi32>
    %373 = arith.cmpi eq, %358, %372 : vector<1x1x13xi32>
    %374 = vector.broadcast %284 : f32 to vector<1x1x13xf32>
    %375 = arith.select %373, %374, %371 : vector<1x1x13xi1>, vector<1x1x13xf32>
    %c2_i32_174 = arith.constant 2 : i32
    %376 = vector.broadcast %c2_i32_174 : i32 to vector<1x1x13xi32>
    %377 = arith.cmpi eq, %358, %376 : vector<1x1x13xi32>
    %378 = vector.broadcast %310 : f32 to vector<1x1x13xf32>
    %379 = arith.select %377, %378, %375 : vector<1x1x13xi1>, vector<1x1x13xf32>
    %c6_i32 = arith.constant 6 : i32
    %380 = vector.broadcast %c6_i32 : i32 to vector<1x1x13xi32>
    %381 = arith.cmpi eq, %358, %380 : vector<1x1x13xi32>
    %382 = vector.broadcast %315 : f32 to vector<1x1x13xf32>
    %383 = arith.select %381, %382, %379 : vector<1x1x13xi1>, vector<1x1x13xf32>
    %c10_i32 = arith.constant 10 : i32
    %384 = vector.broadcast %c10_i32 : i32 to vector<1x1x13xi32>
    %385 = arith.cmpi eq, %358, %384 : vector<1x1x13xi32>
    %386 = vector.broadcast %305 : f32 to vector<1x1x13xf32>
    %387 = arith.select %385, %386, %383 : vector<1x1x13xi1>, vector<1x1x13xf32>
    %c3_i32_175 = arith.constant 3 : i32
    %388 = vector.broadcast %c3_i32_175 : i32 to vector<1x1x13xi32>
    %389 = arith.cmpi eq, %358, %388 : vector<1x1x13xi32>
    %390 = vector.broadcast %331 : f32 to vector<1x1x13xf32>
    %391 = arith.select %389, %390, %387 : vector<1x1x13xi1>, vector<1x1x13xf32>
    %c7_i32 = arith.constant 7 : i32
    %392 = vector.broadcast %c7_i32 : i32 to vector<1x1x13xi32>
    %393 = arith.cmpi eq, %358, %392 : vector<1x1x13xi32>
    %394 = vector.broadcast %336 : f32 to vector<1x1x13xf32>
    %395 = arith.select %393, %394, %391 : vector<1x1x13xi1>, vector<1x1x13xf32>
    %c11_i32 = arith.constant 11 : i32
    %396 = vector.broadcast %c11_i32 : i32 to vector<1x1x13xi32>
    %397 = arith.cmpi eq, %358, %396 : vector<1x1x13xi32>
    %398 = vector.broadcast %326 : f32 to vector<1x1x13xf32>
    %399 = arith.select %397, %398, %395 : vector<1x1x13xi1>, vector<1x1x13xf32>
    %c4_i32 = arith.constant 4 : i32
    %400 = vector.broadcast %c4_i32 : i32 to vector<1x1x13xi32>
    %401 = arith.cmpi eq, %358, %400 : vector<1x1x13xi32>
    %402 = vector.broadcast %352 : f32 to vector<1x1x13xf32>
    %403 = arith.select %401, %402, %399 : vector<1x1x13xi1>, vector<1x1x13xf32>
    %c8_i32 = arith.constant 8 : i32
    %404 = vector.broadcast %c8_i32 : i32 to vector<1x1x13xi32>
    %405 = arith.cmpi eq, %358, %404 : vector<1x1x13xi32>
    %406 = vector.broadcast %357 : f32 to vector<1x1x13xf32>
    %407 = arith.select %405, %406, %403 : vector<1x1x13xi1>, vector<1x1x13xf32>
    %c12_i32 = arith.constant 12 : i32
    %408 = vector.broadcast %c12_i32 : i32 to vector<1x1x13xi32>
    %409 = arith.cmpi eq, %358, %408 : vector<1x1x13xi32>
    %410 = vector.broadcast %347 : f32 to vector<1x1x13xf32>
    %411 = arith.select %409, %410, %407 : vector<1x1x13xi1>, vector<1x1x13xf32>
    %c0_176 = arith.constant 0 : index
    %c0_177 = arith.constant 0 : index
    %c0_178 = arith.constant 0 : index
    %412 = vector.load %arg3[%c0_176, %c0_177, %c0_178] : memref<1x1x13xf32, #tpu.memory_space<vmem>>, vector<1x1x13xf32>
    tpu.vector_store %arg3[%c0_176, %c0_177, %c0_178], %411 {strides = array<i32>} : memref<1x1x13xf32, #tpu.memory_space<vmem>>, vector<1x1x13xf32>,
    return
  }
  func.func @transform_0(%arg0: i32) -> (i32, i32, i32, i32) {
    %c0_i32 = arith.constant 0 : i32
    %c0_i32_0 = arith.constant 0 : i32
    %c0_i32_1 = arith.constant 0 : i32
    %c0_i32_2 = arith.constant 0 : i32
    return %arg0, %c0_i32, %c0_i32_0, %c0_i32_1 : i32, i32, i32, i32
  }
  func.func @transform_1(%arg0: i32) -> (i32, i32, i32) {
    %c0_i32 = arith.constant 0 : i32
    %c0_i32_0 = arith.constant 0 : i32
    %c0_i32_1 = arith.constant 0 : i32
    return %arg0, %c0_i32, %c0_i32_0 : i32, i32, i32
  }
  func.func @transform_2(%arg0: i32) -> (i32, i32, i32) {
    %c0_i32 = arith.constant 0 : i32
    %c0_i32_0 = arith.constant 0 : i32
    %c0_i32_1 = arith.constant 0 : i32
    return %arg0, %c0_i32, %c0_i32_0 : i32, i32, i32
  }
}

</mosaic_0001>

<bundles_post_ra>
// kernel: tpu_custom_call.1
= control target key start
LH: loop header
LB: loop body
LE: loop exit
PB: predicated region body
PF: predicated region fallthrough
CT: control target
= control target key end

     0   :  { %7 = vsyncpa [#allocation4], 0  ;;  %s1767_s0 = inlined_call_operand.hbm [shape: f32[2,4,16,128], index: 0, kind: input, shape index: {}]   ;;  %s1768_s1 = inlined_call_operand.hbm [shape: s32[2,16,128], index: 1, kind: input, shape index: {}]   ;;  %s1769_s2 = inlined_call_operand.hbm [shape: f32[2,1,13], index: 2, kind: output, shape index: {}]  }
   0x1   :  { %9 = vsyncpa [#allocation4 + $0x1], 0 }
   0x2   :  { %10 = vsyncpa [#allocation7], 0 }
   0x3   :  { %12 = vsyncpa [#allocation7 + $0x1], 0 }
   0x4   :  { %13 = vsyncpa [#allocation5], 0 }
   0x5   :  { %15 = vsyncpa [#allocation5 + $0x1], 0  ;;  %s1171_s9 = smov 0   ;;  %s1173_s10 = smov 0  }
   0x6   :  { %s1175_s11 = smov 0   ;;  %s1177_s12 = smov 0  }
   0x7 LB: > { %s1192_s13 = sadd.s32 4294967295, %s1146_s12   ;;  %s837_s14 = sadd.s32 4294967294, %s1146_s12   ;;  %s1146_s12 = sphi %s1177_s12, %s1785_s12   ;;  %s1142_s11 = sphi %s1175_s11, %s1784_s11   ;;  %s1138_s10 = sphi %s1173_s10, %s1783_s10   ;;  %s1134_s9 = sphi %s1171_s9, %s1782_s9  }
   0x8   : > { %s1196_s15 = sadd.s32 1, %s1146_s12   ;;  %s28_s16 = sadd.s32 1, %s1142_s11 }
   0x9   : > { %s25_s17 = ssub.s32 %s1146_s12, %s1196_s15  ;;  %p35_p0 = scmp.ne.s32.totalorder %s1142_s11, %s1138_s10 }
   0xa   : > { %p26_p1 = scmp.eq.s32.totalorder %s25_s17, 0  ;;  %p36_p2 = scmp.eq.s32.totalorder %s1146_s12, 0 }
   0xb   : > { %p41_p3 = scmp.ne.s32.totalorder %s1138_s10, %s1134_s9  ;;  %p42_p4 = scmp.eq.s32.totalorder %s1192_s13, 0 }
   0xc   : > { %s1208_s18 = scalar_select %p26_p1, %s1142_s11, %s28_s16  }
   0xd   : > { %p1210_p5 = por %p36_p2, %p35_p0  ;;  %p1214_p6 = por %p42_p4, %p41_p3 }
   0xe   : > { %p91_p7 = scmp.eq.s32.totalorder %s1192_s13, 1  ;;  %p97_p8 = scmp.eq.s32.totalorder %s837_s14, 1 }
   0xf   : > { %s1773_s20 = scalar_select %p1214_p6, 1, 0 }
  0x10   : > { %p911_p10 = scmp.lt.s32.totalorder %s1146_s12, 2  ;;  %p1221_p11 = por %p91_p7, %p35_p0 }
  0x11   : > { %p1225_p12 = por %p97_p8, %p41_p3  ;;  %s1230_s23 = sand.u32 1, %s1142_s11  }
  0x12   : > { %s1774_s21 = scalar_select %p1221_p11, 1, 0 }
  0x13   : > { %s1775_s22 = scalar_select %p1225_p12, 1, 0 }
  0x14   : > { %s866_s24 = sshll.u32 %s1146_s12, 10  ;;  %s840_s25 = sshll.u32 %s1230_s23, 6 }
  0x15   : > { %s1237_s28 = scalar_lea.hbm %s1767_s0, %s866_s24  ;;  %s121_s29 = scalar_lea.vmem [#allocation3], %s840_s25 }
  0x16   : > { %s128_s30 = sshll.u32 %s121_s29, 4  ;;  %p1241_p13 = pnand %p911_p10, %p1210_p5  ;;  %s1245_s30 = int_to_ptr.vmem [resolvable:$true] %s128_s30 }
  0x17   : > { %s118_s4 = scalar_lea.sflag [#allocation4], %s1230_s23  ;;  %s1016_s5 = scalar_lea.hbm %s1237_s28, 1024 }
  0x18   : > { %p1017_p0 = scmp.ne.s32.totalorder %s1237_s28, %s1016_s5  ;;  %p1018_p1 = pneg %p1241_p13 }
  0x19   : > { %s1021_s8 = scalar_lea.hbm %s1767_s0, 2048  ;;  %p1022_p4 = scmp.lt.u32.totalorder %s1237_s28, %s1767_s0 }
  0x1a   : > { %p1019_p2 = pnand %p1018_p1, %p1017_p0  ;;  %p1023_p5 = scmp.lt.u32.totalorder %s1021_s8, %s1016_s5 }
  0x1b   : > { %p1025_p8 = scmp.lt.u32.totalorder %s1016_s5, %s1237_s28 }
  0x1c   : > { %p1020_p3 = pneg %p1019_p2  ;;  %p1024_p7 = por %p1023_p5, %p1022_p4 }
  0x1e   : > { %p1026_p10 = por %p1025_p8, %p1024_p7 }
  0x20   : > { %p1027_p9 = pnand %p1026_p10, %p1020_p3 }
  0x22   : > { %1030 = shalt.err (!%p1027_p9)
}
  0x23   : > { %s1031_s17 = scalar_lea.vmem %s1245_s30, 1024  ;;  %s1148_s19 = smov [#allocation3]  }
  0x24   : > { %p1032_p0 = scmp.ne.s32.totalorder %s1245_s30, %s1031_s17  ;;  %s1036_s24 = sshll.u32 %s1148_s19, 4  ;;  %s1037_s24 = int_to_ptr.vmem [resolvable:$false] %s1036_s24 }
  0x25   : > { %s1038_s25 = scalar_lea.vmem %s1037_s24, 2048  ;;  %p1039_p11 = scmp.lt.s32.totalorder %s1245_s30, %s1037_s24 }
  0x26   : > { %p1034_p2 = pnand %p1032_p0, %p1018_p1  ;;  %p1040_p4 = scmp.lt.s32.totalorder %s1038_s25, %s1031_s17 }
  0x28   : > { %p1035_p12 = pneg %p1034_p2  ;;  %p1041_p5 = por %p1040_p4, %p1039_p11 }
  0x2a   : > { %p1042_p7 = pnand %p1041_p5, %p1035_p12 }
  0x2c   : > { %1045 = shalt.err (!%p1042_p7)
}
  0x2d   : > { %s1149_s26 = smov 128   ;;  %s1150_s27 = smov 8  }
  0x2e   : > { %903 = dma.hbm_to_vmem [thread:$0]  (!%p1241_p13), %s1237_s28, 1024, %s1245_s30, %s118_s4, %s1149_s26, %s1149_s26, %s1150_s27  }
  0x2f   : > { %p846_p9 = scmp.ge.s32.totalorder %s1146_s12, 1  ;;  %p157_p11 = scmp.lt.s32.totalorder %s1146_s12, 3 }
  0x30   : > { %s843_s29 = sshll.u32 %s1230_s23, 4  ;;  %s867_s6 = sshll.u32 %s1146_s12, 8 }
  0x31   : > { %p1281_p12 = pnand %p846_p9, %p157_p11  ;;  %s142_s7 = scalar_lea.vmem [#allocation6], %s843_s29 }
  0x32   : > { %s149_s8 = sshll.u32 %s142_s7, 4  ;;  %s1289_s17 = scalar_lea.hbm %s1768_s1, %s867_s6  ;;  %s1291_s8 = int_to_ptr.vmem [resolvable:$true] %s149_s8 }
  0x33   : > { %s139_s28 = scalar_lea.sflag [#allocation7], %s1230_s23  ;;  %s1046_s30 = scalar_lea.hbm %s1289_s17, 256 }
  0x34   : > { %p1047_p3 = scmp.ne.s32.totalorder %s1289_s17, %s1046_s30  ;;  %s1051_s24 = scalar_lea.hbm %s1768_s1, 512 }
  0x35   : > { %p1052_p0 = scmp.lt.u32.totalorder %s1289_s17, %s1768_s1  ;;  %p1053_p2 = scmp.lt.u32.totalorder %s1051_s24, %s1046_s30 }
  0x36   : > { %p1049_p8 = pnand %p1047_p3, %p1018_p1  ;;  %p1055_p5 = scmp.lt.u32.totalorder %s1046_s30, %s1289_s17 }
  0x37   : > { %p1054_p4 = por %p1053_p2, %p1052_p0 }
  0x38   : > { %p1050_p10 = pneg %p1049_p8 }
  0x39   : > { %p1056_p7 = por %p1055_p5, %p1054_p4 }
  0x3b   : > { %p1057_p9 = pnand %p1056_p7, %p1050_p10 }
  0x3d   : > { %1060 = shalt.err (!%p1057_p9)
}
  0x3e   : > { %s1061_s6 = scalar_lea.vmem %s1291_s8, 256  ;;  %s1151_s7 = smov [#allocation6]  }
  0x3f   : > { %p1062_p11 = scmp.ne.s32.totalorder %s1291_s8, %s1061_s6  ;;  %s1066_s14 = sshll.u32 %s1151_s7, 4  ;;  %s1067_s14 = int_to_ptr.vmem [resolvable:$false] %s1066_s14 }
  0x40   : > { %s1068_s16 = scalar_lea.vmem %s1067_s14, 512  ;;  %p1069_p6 = scmp.lt.s32.totalorder %s1291_s8, %s1067_s14 }
  0x41   : > { %p1064_p3 = pnand %p1062_p11, %p1018_p1  ;;  %p1070_p0 = scmp.lt.s32.totalorder %s1068_s16, %s1061_s6 }
  0x43   : > { %p1065_p8 = pneg %p1064_p3  ;;  %p1071_p2 = por %p1070_p0, %p1069_p6 }
  0x45   : > { %p1072_p4 = pnand %p1071_p2, %p1065_p8 }
  0x47   : > { %1075 = shalt.err (!%p1072_p4)
}
  0x48   : > { %906 = dma.hbm_to_vmem [thread:$0]  (!%p1241_p13), %s1289_s17, 256, %s1291_s8, %s139_s28, %s1149_s26, %s1149_s26, %s1150_s27  }
  0x49   : > { %161 = sbr.rel (%p1281_p12) target bundleno = 527 (0x20f), region = 28  ;;  %s1325_s30 = sand.u32 (!%p1281_p12), 1, %s1138_s10  }
  0x4a   : > { %s847_s4 = sshll.u32 (!%p1281_p12), %s1325_s30, 6  ;;  %s164_s19 = scalar_lea.sflag (!%p1281_p12), [#allocation4], %s1325_s30 }
  0x4b   : > { %s167_s3 = scalar_lea.vmem (!%p1281_p12), [#allocation3], %s847_s4  ;;  %p1778_p6 = scmp.ne.s32.totalorder (!%p1281_p12), %s1773_s20, 0 }
  0x50   : > { %1121 = dma.done.wait (%p1778_p6), %s164_s19, 1024  }
  0x51   : > { %1123 = vsyncadd (%p1778_p6), %s164_s19, 4294966272  ;;  %s848_s23 = sshll.u32 %s1325_s30, 4  ;;  %s173_s26 = scalar_lea.sflag [#allocation7], %s1325_s30 }
  0x52   : > { %s1335_s27 = scalar_lea.vmem [#allocation6], %s848_s23 }
  0x53   : > { %1125 = dma.done.wait (%p1778_p6), %s173_s26, 256  }
  0x54   : > { %1127 = vsyncadd (%p1778_p6), %s173_s26, 4294967040  ;;  %v1341_v0 = vld [vmem:[%s167_s3] sm:$0xff]  ;;  %v1343_v1 = vld [vmem:[%s167_s3 + $0x8] sm:$0xff]  ;;  %v1152_v7 = vmov 0.0   ;;  %v331_v10 = vlaneseq  ;;  %s1153_s20 = smov 1   ;;  %s1154_s5 = smov 127  }
  0x55   : > { %v1345_v2 = vld [vmem:[%s167_s3 + $0x10] sm:$0xff]  ;;  %v1347_v3 = vld [vmem:[%s167_s3 + $0x18] sm:$0xff]  ;;  %v1351_v4 = vld [vmem:[%s167_s3 + $0x20] sm:$0xff]  ;;  %p1779_p1 = scmp.ne.s32.totalorder %s1774_s21, 0 }
  0x56   : > { %vm220_vm0 = vcmp.gt.f32.partialorder %v1345_v2, %v1341_v0  ;;  %v1353_v5 = vld [vmem:[%s167_s3 + $0x28] sm:$0xff]  ;;  %vm221_vm1 = vcmp.gt.f32.partialorder %v1347_v3, %v1343_v1  ;;  %v1360_v9 = vld [vmem:[%s167_s3 + $0x30] sm:$0xff]  ;;  %v1366_v13 = vld [vmem:[%s167_s3 + $0x38] sm:$0xff]  ;;  %v1378_v19 = vshrl.u32 %v331_v10, 7 }
  0x57   : > { %v222_v6 = vsel %vm220_vm0, %v1345_v2, %v1341_v0  ;;  %v224_v8 = vsel %vm220_vm0, 1.0, %v1152_v7  ;;  %v223_v11 = vsel %vm221_vm1, %v1347_v3, %v1343_v1  ;;  %v225_v12 = vsel %vm221_vm1, 1.0, %v1152_v7  ;;  %v1390_v23 = vld [vmem:[%s1335_s27] sm:$0xff]  ;;  %v1393_v24 = vld [vmem:[%s1335_s27 + $0x8] sm:$0xff] }
  0x58   : > { %vm235_vm2 = vcmp.gt.f32.partialorder %v1351_v4, %v222_v6  ;;  %vm236_vm3 = vcmp.gt.f32.partialorder %v1353_v5, %v223_v11  ;;  %v1387_v22 = vadd.s32 8, %v1378_v19  ;;  %vm342_vm6 = vcmp.lt.s32.totalorder %v1378_v19, 1 }
  0x59   : > { %v237_v14 = vsel %vm235_vm2, %v1351_v4, %v222_v6  ;;  %v239_v15 = vsel %vm235_vm2, 2.0, %v224_v8  ;;  %v238_v16 = vsel %vm236_vm3, %v1353_v5, %v223_v11  ;;  %v240_v17 = vsel %vm236_vm3, 2.0, %v225_v12 }
  0x5a   : > { %vm250_vm4 = vcmp.gt.f32.partialorder %v1360_v9, %v237_v14  ;;  %vm251_vm5 = vcmp.gt.f32.partialorder %v1366_v13, %v238_v16  ;;  %vm345_vm7 = vcmp.ge.s32.totalorder %v1378_v19, 1  ;;  %vm387_vm8 = vcmp.lt.s32.totalorder %v1378_v19, 7 }
  0x5b   : > { %v1375_v18 = vsel %vm250_vm4, 3.0, %v239_v15  ;;  %v1382_v20 = vsel %vm251_vm5, 3.0, %v240_v17  ;;  %v1403_v28 = vcvt.s32.f32 %v1390_v23  ;;  %v1406_v29 = vcvt.s32.f32 %v1393_v24 }
  0x5c   : > { %v960_v21 = vpack.i.bf16 %v1382_v20, %v1375_v18  ;;  %v420_v25 = vrot.slane %v1375_v18, 7  ;;  %v421_v26 = vrot.slane %v1382_v20, 7  ;;  %v460_v27 = vrot.slane %v1375_v18, 1 }
  0x5d   : > { %vm391_vm9 = vcmp.lt.s32.totalorder %v1387_v22, 15  ;;  %v461_v30 = vrot.slane %v1382_v20, 1  ;;  %v340_v38 = vrot.slane %v1403_v28, 7  ;;  %v341_v39 = vrot.slane %v1406_v29, 7 }
  0x5e   : > { %961 = vrot.lane.b32.xlu1 %v960_v21, %s1153_s20  ;;  %v1412_v31 = vsel %vm342_vm6, %v420_v25, %v421_v26  ;;  %v423_v32 = vsel %vm342_vm6, %v421_v26, %v420_v25  ;;  %v1438_v40 = vsel %vm250_vm4, %v1360_v9, %v237_v14  ;;  %v1445_v42 = vsel %vm251_vm5, %v1366_v13, %v238_v16 }
  0x5f   : > { %v1418_v33 = vsel %vm345_vm7, %v423_v32, 0.0  ;;  %v1423_v34 = vsel %vm387_vm8, %v460_v27, %v461_v30  ;;  %v463_v35 = vsel %vm387_vm8, %v461_v30, %v460_v27  ;;  %v274_v43 = vsub.f32 %v1345_v2, %v1438_v40 }
  0x60   : > { %v950_v36 = vpack.i.bf16 %v1412_v31, %v1418_v33  ;;  %v1431_v37 = vsel %vm391_vm9, %v463_v35, 0.0  ;;  %v1453_v44 = vsel %vm342_vm6, %v340_v38, %v341_v39  ;;  %v275_v45 = vsub.f32 %v1347_v3, %v1445_v42 }
  0x61   : > { %v975_v41 = vpack.i.bf16 %v1431_v37, %v1423_v34  ;;  %v287_v46 = vsub.f32 %v1351_v4, %v1438_v40  ;;  %v276_v47 = vmul.f32 1.442695, %v274_v43  ;;  %v344_v48 = vsel %vm342_vm6, %v341_v39, %v340_v38 }
  0x62   : > { %966 = vrot.lane.b32.xlu1 %v960_v21, %s1154_s5  ;;  %951 = vrot.lane.b32.xlu0 %v950_v36, %s1153_s20  ;;  %v278_v49 = vmul.f32 1.442695, %v275_v45  ;;  %v262_v50 = vsub.f32 %v1341_v0, %v1438_v40  ;;  %v263_v51 = vsub.f32 %v1343_v1, %v1445_v42  ;;  %v288_v52 = vsub.f32 %v1353_v5, %v1445_v42 }
  0x63   : > { %v289_v53 = vmul.f32 1.442695, %v287_v46  ;;  %v1473_v54 = vsel %vm345_vm7, %v344_v48, 0.0  ;;  %980 = vpow2.f32 %v276_v47  ;;  %v300_v55 = vsub.f32 %v1360_v9, %v1438_v40 }
  0x64   : > { %v264_v56 = vmul.f32 1.442695, %v262_v50  ;;  %v266_v57 = vmul.f32 1.442695, %v263_v51  ;;  %982 = vpow2.f32 %v278_v49  ;;  %v385_v58 = vrot.slane %v1403_v28, 1 }
  0x65   : > { %v386_v59 = vrot.slane %v1406_v29, 1  ;;  %v291_v60 = vmul.f32 1.442695, %v288_v52  ;;  %v301_v61 = vsub.f32 %v1366_v13, %v1445_v42  ;;  %v302_v62 = vmul.f32 1.442695, %v300_v55 }
  0x66   : > { %976 = vrot.lane.b32.xlu1 %v975_v41, %s1154_s5  ;;  %956 = vrot.lane.b32.xlu0 %v950_v36, %s1154_s5  ;;  %984 = vpow2.f32 %v264_v56  ;;  %vm203_vm10 = vcmp.ne.s32.totalorder %v1390_v23, 255  ;;  %vm204_vm11 = vcmp.ne.s32.totalorder %v1393_v24, 255  ;;  %v230_v50 = vadd.f32 %v1345_v2, %v1341_v0 }
  0x67   : > { %986 = vpow2.f32 %v266_v57  ;;  %v389_v63 = vsel %vm387_vm8, %v386_v59, %v385_v58  ;;  %v304_v6 = vmul.f32 1.442695, %v301_v61  ;;  %v1517_v21 = vsel %vm387_vm8, %v385_v58, %v386_v59 }
  0x68   : > { %988 = vpow2.f32 %v289_v53  ;;  %v1495_v8 = vsel %vm391_vm9, %v389_v63, 0.0  ;;  %v1535_v19 = vsel %vm203_vm10, %v1390_v23, 0  ;;  %v1540_v30 = vsel %vm204_vm11, %v1393_v24, 0 }
  0x69   : > { %990 = vpow2.f32 %v291_v60  ;;  %vm213_vm12 = vcmp.eq.s32.totalorder %v1535_v19, 0  ;;  %vm214_vm13 = vcmp.eq.s32.totalorder %v1540_v30, 0  ;;  %vm226_vm14 = vcmp.eq.s32.totalorder %v1535_v19, 1 }
  0x6a   : > { %351 = vrot.lane.b32.xlu1 %v1453_v44, %s1153_s20  ;;  %971 = vrot.lane.b32.xlu0 %v975_v41, %s1153_s20  ;;  %992 = vpow2.f32 %v302_v62  ;;  %v215_v35 = vsel %vm213_vm12, %v1341_v0, 0.0  ;;  %v216_v39 = vsel %vm214_vm13, %v1343_v1, 0.0  ;;  %vm256_vm15 = vcmp.eq.s32.totalorder %v1535_v19, 3 }
  0x6b   : > { %994 = vpow2.f32 %v304_v6  ;;  %vm257_vm0 = vcmp.eq.s32.totalorder %v1540_v30, 3  ;;  %vm227_vm1 = vcmp.eq.s32.totalorder %v1540_v30, 1  ;;  %v228_v41 = vsel %vm226_vm14, %v1345_v2, %v215_v35 }
  0x6c   : > { %v229_v43 = vsel %vm227_vm1, %v1347_v3, %v216_v39  ;;  %vm241_vm2 = vcmp.eq.s32.totalorder %v1535_v19, 2  ;;  %vm242_vm3 = vcmp.eq.s32.totalorder %v1540_v30, 2  ;;  %v231_v51 = vadd.f32 %v1347_v3, %v1343_v1 }
  0x6d   : > { %v1497_v11 = vpop.eup %980  ;;  %v243_v46 = vsel %vm241_vm2, %v1351_v4, %v228_v41  ;;  %v244_v47 = vsel %vm242_vm3, %v1353_v5, %v229_v43  ;;  %v245_v52 = vadd.f32 %v1351_v4, %v230_v50  ;;  %v849_v0 = vsel %vm203_vm10, 1.0, %v1152_v7 }
  0x6e   : > { %362 = vrot.lane.b32.xlu1 %v1453_v44, %s1154_s5  ;;  %349 = vrot.lane.b32.xlu0 %v1473_v54, %s1153_s20  ;;  %v1501_v12 = vpop.eup %982  ;;  %v258_v48 = vsel %vm256_vm15, %v1360_v9, %v243_v46  ;;  %v259_v49 = vsel %vm257_vm0, %v1366_v13, %v244_v47  ;;  %v246_v53 = vadd.f32 %v1353_v5, %v231_v51  ;;  %v850_v1 = vsel %vm204_vm11, 1.0, %v1152_v7 }
  0x6f   : > { %v260_v55 = vadd.f32 %v1360_v9, %v245_v52  ;;  %v538_v35 = vsel %vm213_vm12, %v849_v0, 0.0  ;;  %v577_v51 = vsel %vm226_vm14, %v849_v0, 0.0  ;;  %v578_v52 = vsel %vm227_vm1, %v850_v1, 0.0 }
  0x70   : > { %v1505_v14 = vpop.eup %984  ;;  %v261_v56 = vadd.f32 %v1366_v13, %v246_v53  ;;  %v1632_v19 = vand.u32 127, %v331_v10 }
  0x71   : > { %v1507_v15 = vpop.eup %986  ;;  %v283_v16 = vadd.f32 %v1505_v14, %v1497_v11 }
  0x72   : > { %371 = vrot.lane.b32.xlu1 %v1406_v29, %s1153_s20  ;;  %360 = vrot.lane.b32.xlu0 %v1473_v54, %s1154_s5  ;;  %v1511_v17 = vpop.eup %988  ;;  %v284_v22 = vadd.f32 %v1507_v15, %v1501_v12  ;;  %vm353_vm4 = vcmp.ge.s32.totalorder %v1632_v19, 1  ;;  %vm364_vm5 = vcmp.lt.s32.totalorder %v1632_v19, 127  ;;  %vm694_vm10 = vcmp.eq.s32.totalorder %v1632_v19, 0 }
  0x73   : > { %v1523_v25 = vpop.eup %990  ;;  %v296_v26 = vadd.f32 %v1511_v17, %v283_v16  ;;  %vm697_vm11 = vcmp.eq.s32.totalorder %v1632_v19, 1  ;;  %vm700_vm12 = vcmp.eq.s32.totalorder %v1632_v19, 5  ;;  %vm706_vm14 = vcmp.eq.s32.totalorder %v1632_v19, 2 }
  0x74   : > { %v1527_v27 = vpop.eup %992  ;;  %v297_v32 = vadd.f32 %v1523_v25, %v284_v22  ;;  %vm715_vm1 = vcmp.eq.s32.totalorder %v1632_v19, 3 }
  0x75   : > { %v1548_v36 = vpop.eup %994  ;;  %v309_v38 = vadd.f32 %v1527_v27, %v296_v26 }
  0x76   : > { %379 = vrot.lane.b32.xlu1 %v1406_v29, %s1154_s5  ;;  %369 = vrot.lane.b32.xlu0 %v1403_v28, %s1153_s20  ;;  %v310_v45 = vadd.f32 %v1548_v36, %v297_v32 }
  0x77   : > { %996 = vrcp.f32 %v309_v38 }
  0x78   : > { %998 = vlog2.f32 %v309_v38 }
  0x79   : > { %1000 = vlog2.f32 %v310_v45 }
  0x7a   : > { %396 = vrot.lane.b32.xlu1 %v1495_v8, %s1153_s20  ;;  %377 = vrot.lane.b32.xlu0 %v1403_v28, %s1154_s5  ;;  %1002 = vrcp.f32 %v310_v45 }
  0x7e   : > { %406 = vrot.lane.b32.xlu1 %v1495_v8, %s1154_s5  ;;  %394 = vrot.lane.b32.xlu0 %v1517_v21, %s1153_s20  ;;  %s863_s20 = sshll.u32 %s1192_s13, 4  ;;  %s736_s13 = scalar_lea.sflag [#allocation5], %s1325_s30 }
  0x81   : > { %v997_v57 = vpop.eup %996 }
  0x82   : > { %404 = vrot.lane.b32.xlu0 %v1517_v21, %s1154_s5  ;;  %v999_v58 = vpop.eup %998  ;;  %v536_v5 = vmul.f32 %v997_v57, %v849_v0  ;;  %v617_v57 = vsel %vm242_vm3, %v850_v1, 0.0  ;;  %vm721_vm3 = vcmp.eq.s32.totalorder %v1632_v19, 11 }
  0x83   : > { %v1001_v59 = vpop.eup %1000  ;;  %v312_v60 = vmul.f32 0.6931472, %v999_v58 }
  0x84   : > { %v1003_v61 = vpop.eup %1002  ;;  %v314_v2 = vmul.f32 0.6931472, %v1001_v59  ;;  %v542_v32 = vmul.f32 %v1505_v14, %v536_v5  ;;  %v581_v46 = vmul.f32 %v1497_v11, %v536_v5  ;;  %v620_v11 = vmul.f32 %v1511_v17, %v536_v5 }
  0x85   : > { %v319_v3 = vadd.f32 %v312_v60, %v1438_v40  ;;  %v537_v9 = vmul.f32 %v1003_v61, %v850_v1 }
  0x86   : > { %v320_v4 = vadd.f32 %v314_v2, %v1445_v42  ;;  %v539_v42 = vsel %vm214_vm13, %v850_v1, 0.0  ;;  %v593_v59 = vmul.f32 %v581_v46, %v577_v51  ;;  %vm703_vm13 = vcmp.eq.s32.totalorder %v1632_v19, 9 }
  0x87   : > { %v321_v13 = vsub.f32 %v319_v3, %v258_v48  ;;  %v325_v62 = vmul.f32 4.0, %v319_v3  ;;  %v543_v24 = vmul.f32 %v1507_v15, %v537_v9  ;;  %v544_v43 = vadd.f32 %v539_v42, %v538_v35 }
  0x88   : > { %v322_v63 = vsub.f32 %v320_v4, %v259_v49  ;;  %v326_v6 = vmul.f32 4.0, %v320_v4  ;;  %v582_v47 = vmul.f32 %v1501_v12, %v537_v9  ;;  %v554_v49 = vmul.f32 %v542_v32, %v538_v35 }
  0x89   : > { %v323_v16 = vmul.f32 %v849_v0, %v321_v13  ;;  %v327_v22 = vsub.f32 %v325_v62, %v260_v55  ;;  %v566_v14 = vadd.f32 %v543_v24, %v542_v32  ;;  %v555_v15 = vmul.f32 %v543_v24, %v539_v42 }
  0x8a   : > { %v324_v26 = vmul.f32 %v850_v1, %v322_v63  ;;  %v328_v23 = vsub.f32 %v326_v6, %v261_v56  ;;  %v583_v55 = vadd.f32 %v578_v52, %v577_v51  ;;  %v621_v12 = vmul.f32 %v1523_v25, %v537_v9 }
  0x8b   : > { %v329_v40 = vmul.f32 %v849_v0, %v327_v22  ;;  %v518_v39 = vmul.f32 0.95, %v323_v16  ;;  %v616_v56 = vsel %vm241_vm2, %v849_v0, 0.0  ;;  %v556_v58 = vadd.f32 %v555_v15, %v554_v49 }
  0x8c   : > { %v330_v38 = vmul.f32 %v850_v1, %v328_v23  ;;  %v519_v41 = vmul.f32 0.95, %v324_v26  ;;  %v594_v60 = vmul.f32 %v582_v47, %v578_v52  ;;  %v1619_v61 = vadd.f32 %v617_v57, %v616_v56 }
  0x8d   : > { %v520_v45 = vmul.f32 0.0125, %v329_v40  ;;  %v605_v2 = vadd.f32 %v582_v47, %v581_v46  ;;  %v632_v3 = vmul.f32 %v620_v11, %v616_v56  ;;  %v633_v4 = vmul.f32 %v621_v12, %v617_v57 }
  0x8e   : > { %v521_v48 = vmul.f32 0.0125, %v330_v38  ;;  %v595_v17 = vadd.f32 %v594_v60, %v593_v59  ;;  %v1621_v13 = vadd.f32 %v621_v12, %v620_v11  ;;  %v655_v62 = vsel %vm256_vm15, %v849_v0, 0.0 }
  0x8f   : > { %v1605_v50 = vadd.f32 %v520_v45, %v518_v39  ;;  %v634_v25 = vadd.f32 %v633_v4, %v632_v3  ;;  %v656_v63 = vsel %vm257_vm0, %v850_v1, 0.0  ;;  %v659_v6 = vmul.f32 %v1527_v27, %v536_v5 }
  0x90   : > { %v1611_v53 = vadd.f32 %v521_v48, %v519_v41  ;;  %v660_v16 = vmul.f32 %v1548_v36, %v537_v9  ;;  %v661_v23 = vadd.f32 %v656_v63, %v655_v62  ;;  %v419_v27 = vmul.f32 8.0, %v1382_v20 }
  0x91   : > { %v671_v22 = vmul.f32 %v659_v6, %v655_v62  ;;  %v418_v0 = vmul.f32 8.0, %v1375_v18  ;;  %v339_v38 = vmul.f32 8.0, %v1406_v29  ;;  %v338_v51 = vmul.f32 8.0, %v1403_v28 }
  0x92   : > { %v672_v26 = vmul.f32 %v660_v16, %v656_v63  ;;  %v683_v24 = vadd.f32 %v660_v16, %v659_v6  ;;  %vm709_vm15 = vcmp.eq.s32.totalorder %v1632_v19, 6  ;;  %vm712_vm0 = vcmp.eq.s32.totalorder %v1632_v19, 10 }
  0x93   : > { %vm718_vm2 = vcmp.eq.s32.totalorder %v1632_v19, 7 }
  0x94   : > { %v1629_v32 = vadd.f32 %v672_v26, %v671_v22 }
  0xa1   : > { %567 = vadd.xlane.f32.xlu0 %v566_v14 }
  0xa2   : > { %545 = vadd.xlane.f32.xlu1 %v544_v43 }
  0xa5   : > { %557 = vadd.xlane.f32.xlu0 %v556_v58 }
  0xa6   : > { %584 = vadd.xlane.f32.xlu1 %v583_v55 }
  0xa9   : > { %596 = vadd.xlane.f32.xlu0 %v595_v17 }
  0xaa   : > { %606 = vadd.xlane.f32.xlu1 %v605_v2 }
  0xae   : > { %635 = vadd.xlane.f32.xlu1 %v634_v25 }
  0xb2   : > { %662 = vadd.xlane.f32.xlu1 %v661_v23 }
  0xb6   : > { %684 = vadd.xlane.f32.xlu1 %v683_v24 }
  0xd0   : > { %v962_v35 = vpop.permute.xlu1 %961 }
  0xd1   : > { %v964_v40 = vunpack.i.h.bf16 %v962_v35  ;;  %v963_v39 = vunpack.i.l.bf16 %v962_v35 }
  0xd3   : > { %v449_v29 = vsel %vm353_vm4, %v964_v40, 0.0 }
  0xd4   : > { %v967_v30 = vpop.permute.xlu1 %966  ;;  %v952_v36 = vpop.permute.xlu0 %951 }
  0xd5   : > { %v954_v1 = vunpack.i.h.bf16 %v952_v36  ;;  %v953_v5 = vunpack.i.l.bf16 %v952_v36  ;;  %v969_v43 = vunpack.i.h.bf16 %v967_v30  ;;  %v968_v18 = vunpack.i.l.bf16 %v967_v30 }
  0xd7   : > { %v431_v42 = vsel %vm353_vm4, %v954_v1, 0.0  ;;  %v430_v10 = vsel %vm353_vm4, %v953_v5, 0.0  ;;  %v456_v28 = vsel %vm364_vm5, %v968_v18, 0.0 }
  0xd8   : > { %v977_v9 = vpop.permute.xlu1 %976  ;;  %v433_v41 = vsub.f32 %v419_v27, %v431_v42  ;;  %v432_v20 = vsub.f32 %v418_v0, %v430_v10  ;;  %v957_v45 = vpop.permute.xlu0 %956 }
  0xd9   : > { %v959_v46 = vunpack.i.h.bf16 %v957_v45  ;;  %v958_v47 = vunpack.i.l.bf16 %v957_v45  ;;  %v979_v17 = vunpack.i.h.bf16 %v977_v9  ;;  %v978_v62 = vunpack.i.l.bf16 %v977_v9 }
  0xda   : > { %v434_v14 = vsub.f32 %v432_v20, %v1418_v33  ;;  %v435_v49 = vsub.f32 %v433_v41, %v1412_v31  ;;  %v448_v33 = vsel %vm353_vm4, %v963_v39, 0.0  ;;  %v457_v31 = vsel %vm364_vm5, %v969_v43, 0.0 }
  0xdb   : > { %v441_v52 = vsel %vm364_vm5, %v959_v46, 0.0  ;;  %v440_v55 = vsel %vm364_vm5, %v958_v47, 0.0  ;;  %v481_v0 = vsel %vm364_vm5, %v979_v17, 0.0  ;;  %v480_v1 = vsel %vm364_vm5, %v978_v62, 0.0 }
  0xdc   : > { %v352_v48 = vpop.permute.xlu1 %351  ;;  %v442_v12 = vsub.f32 %v434_v14, %v440_v55  ;;  %v443_v56 = vsub.f32 %v435_v49, %v441_v52  ;;  %v972_v57 = vpop.permute.xlu0 %971 }
  0xdd   : > { %v355_v15 = vsel %vm353_vm4, %v352_v48, 0.0  ;;  %v974_v58 = vunpack.i.h.bf16 %v972_v57  ;;  %v973_v59 = vunpack.i.l.bf16 %v972_v57 }
  0xde   : > { %v357_v11 = vsub.f32 %v339_v38, %v355_v15  ;;  %v450_v3 = vsub.f32 %v442_v12, %v448_v33  ;;  %v451_v4 = vsub.f32 %v443_v56, %v449_v29 }
  0xdf   : > { %v471_v63 = vsel %vm353_vm4, %v974_v58, 0.0  ;;  %v470_v6 = vsel %vm353_vm4, %v973_v59, 0.0 }
  0xe0   : > { %v359_v60 = vsub.f32 %v357_v11, %v1453_v44  ;;  %v363_v2 = vpop.permute.xlu1 %362  ;;  %v458_v22 = vsub.f32 %v450_v3, %v456_v28  ;;  %v459_v26 = vsub.f32 %v451_v4, %v457_v31  ;;  %v350_v23 = vpop.permute.xlu0 %349 }
  0xe1   : > { %v366_v25 = vsel %vm364_vm5, %v363_v2, 0.0  ;;  %v354_v44 = vsel %vm353_vm4, %v350_v23, 0.0 }
  0xe2   : > { %v368_v16 = vsub.f32 %v359_v60, %v366_v25  ;;  %v472_v35 = vsub.f32 %v458_v22, %v470_v6  ;;  %v473_v30 = vsub.f32 %v459_v26, %v471_v63  ;;  %v356_v27 = vsub.f32 %v338_v51, %v354_v44 }
  0xe4   : > { %v372_v24 = vpop.permute.xlu1 %371  ;;  %v474_v9 = vsub.f32 %v472_v35, %v1423_v34  ;;  %v475_v40 = vsub.f32 %v473_v30, %v1431_v37  ;;  %v361_v42 = vpop.permute.xlu0 %360  ;;  %v358_v10 = vsub.f32 %v356_v27, %v1473_v54 }
  0xe5   : > { %v374_v36 = vsel %vm353_vm4, %v372_v24, 0.0  ;;  %v365_v38 = vsel %vm364_vm5, %v361_v42, 0.0 }
  0xe6   : > { %v376_v5 = vsub.f32 %v368_v16, %v374_v36  ;;  %v482_v41 = vsub.f32 %v474_v9, %v480_v1  ;;  %v483_v20 = vsub.f32 %v475_v40, %v481_v0  ;;  %v367_v43 = vsub.f32 %v358_v10, %v365_v38 }
  0xe8   : > { %v380_v39 = vpop.permute.xlu1 %379  ;;  %v484_v46 = vmax.f32 %v482_v41, 0.0  ;;  %v485_v47 = vmax.f32 %v483_v20, 0.0  ;;  %v370_v48 = vpop.permute.xlu0 %369 }
  0xe9   : > { %v382_v45 = vsel %vm364_vm5, %v380_v39, 0.0  ;;  %v373_v34 = vsel %vm353_vm4, %v370_v48, 0.0 }
  0xea   : > { %v384_v18 = vsub.f32 %v376_v5, %v382_v45  ;;  %vm486_vm6 = vcmp.ge.f32.partialorder %v484_v46, 0.1  ;;  %vm487_vm7 = vcmp.ge.f32.partialorder %v485_v47, 0.1  ;;  %v375_v54 = vsub.f32 %v367_v43, %v373_v34 }
  0xeb   : > { %v489_v15 = vsel %vm487_vm7, 1.0, %v1152_v7  ;;  %v488_v51 = vsel %vm486_vm6, 1.0, %v1152_v7  ;;  %vm730_vm6 = vcmp.eq.s32.totalorder %v1632_v19, 12  ;;  %vm733_vm7 = vcmask 98304  }
  0xec   : > { %v397_v37 = vpop.permute.xlu1 %396  ;;  %v378_v29 = vpop.permute.xlu0 %377  ;;  %v491_v52 = vadd.f32 0.01, %v489_v15  ;;  %v490_v55 = vadd.f32 0.01, %v488_v51 }
  0xed   : > { %v399_v14 = vsel %vm353_vm4, %v397_v37, 0.0  ;;  %v381_v11 = vsel %vm364_vm5, %v378_v29, 0.0 }
  0xee   : > { %v401_v49 = vsub.f32 %v384_v18, %v399_v14  ;;  %v383_v12 = vsub.f32 %v375_v54, %v381_v11  ;;  %1004 = vrcp.f32 %v491_v52 }
  0xef   : > { %1006 = vrcp.f32 %v490_v55 }
  0xf0   : > { %v403_v33 = vsub.f32 %v401_v49, %v1495_v8  ;;  %v407_v31 = vpop.permute.xlu1 %406  ;;  %v395_v28 = vpop.permute.xlu0 %394 }
  0xf1   : > { %v409_v56 = vsel %vm364_vm5, %v407_v31, 0.0  ;;  %v398_v58 = vsel %vm353_vm4, %v395_v28, 0.0  ;;  %vm724_vm4 = vcmp.eq.s32.totalorder %v1632_v19, 4 }
  0xf2   : > { %v411_v57 = vsub.f32 %v403_v33, %v409_v56  ;;  %v400_v60 = vsub.f32 %v383_v12, %v398_v58 }
  0xf4   : > { %v413_v59 = vmax.f32 %v411_v57, 0.0  ;;  %v405_v2 = vpop.permute.xlu0 %404  ;;  %v402_v3 = vsub.f32 %v400_v60, %v1517_v21 }
  0xf5   : > { %v408_v8 = vsel %vm364_vm5, %v405_v2, 0.0  ;;  %vm727_vm5 = vcmp.eq.s32.totalorder %v1632_v19, 8 }
  0xf6   : > { %vm415_vm8 = vcmp.ge.f32.partialorder %v413_v59, 0.1  ;;  %v410_v4 = vsub.f32 %v402_v3, %v408_v8 }
  0xf7   : > { %v417_v25 = vsel %vm415_vm8, 1.0, %v1152_v7 }
  0xf8   : > { %v1005_v17 = vpop.eup %1004  ;;  %v412_v62 = vmax.f32 %v410_v4, 0.0 }
  0xf9   : > { %v1007_v63 = vpop.eup %1006  ;;  %v495_v6 = vmul.f32 %v1005_v17, %v489_v15 }
  0xfa   : > { %v493_v16 = vmul.f32 %v1007_v63, %v488_v51  ;;  %vm414_vm9 = vcmp.ge.f32.partialorder %v412_v62, 0.1 }
  0xfb   : > { %v497_v22 = vmax.f32 %v495_v6, 0.0  ;;  %v503_v26 = vand.u32 2147483647, %v495_v6  ;;  %v499_v23 = vmul.f32 %v495_v6, %v417_v25  ;;  %v416_v44 = vsel %vm414_vm9, 1.0, %v1152_v7 }
  0xfc   : > { %v496_v24 = vmax.f32 %v493_v16, 0.0  ;;  %v502_v21 = vand.u32 2147483647, %v493_v16  ;;  %v498_v35 = vmul.f32 %v493_v16, %v416_v44 }
  0xfd   : > { %v505_v30 = vsub.f32 0.0, %v503_v26  ;;  %v501_v27 = vsub.f32 %v497_v22, %v499_v23 }
  0xfe   : > { %v504_v36 = vsub.f32 0.0, %v502_v21  ;;  %v500_v0 = vsub.f32 %v496_v24, %v498_v35 }
  0xff   : > { %v508_v1 = vmul.f32 1.442695, %v505_v30 }
 0x100   : > { %v506_v5 = vmul.f32 1.442695, %v504_v36 }
 0x101   : > { %1008 = vpow2.f32 %v508_v1 }
 0x102   : > { %1010 = vpow2.f32 %v506_v5 }
 0x10b   : > { %v1009_v9 = vpop.eup %1008 }
 0x10c   : > { %v1011_v40 = vpop.eup %1010  ;;  %v511_v42 = vadd.f32 1.0, %v1009_v9 }
 0x10d   : > { %v510_v10 = vadd.f32 1.0, %v1011_v40 }
 0x10e   : > { %1012 = vlog2.f32 %v511_v42 }
 0x10f   : > { %1014 = vlog2.f32 %v510_v10 }
 0x118   : > { %v1013_v38 = vpop.eup %1012 }
 0x119   : > { %v1015_v39 = vpop.eup %1014  ;;  %v515_v7 = vmul.f32 0.6931472, %v1013_v38 }
 0x11a   : > { %v513_v41 = vmul.f32 0.6931472, %v1015_v39 }
 0x11b   : > { %v517_v20 = vadd.f32 %v515_v7, %v501_v27 }
 0x11c   : > { %v516_v43 = vadd.f32 %v513_v41, %v500_v0 }
 0x11d   : > { %v525_v45 = vadd.f32 %v1611_v53, %v517_v20 }
 0x11e   : > { %v524_v18 = vadd.f32 %v1605_v50, %v516_v43 }
 0x120   : > { %v526_v46 = vadd.f32 %v525_v45, %v524_v18 }
 0x122   : > { %527 = vadd.xlane.f32.xlu0 %v526_v46 }
 0x126   : > { %623 = vadd.xlane.f32.xlu0 %v1619_v61 }
 0x12a   : > { %645 = vadd.xlane.f32.xlu0 %v1621_v13 }
 0x12e   : > { %674 = vadd.xlane.f32.xlu0 %v1629_v32  ;;  %v568_v34 = vpop.xlane.xlu0 %567 }
 0x12f   : > { %v546_v47 = vpop.xlane.xlu1 %545  ;;  %v569_v53 = vrot.slane %v568_v34, 4 }
 0x130   : > { %v547_v49 = vrot.slane %v546_v47, 4 }
 0x131   : > { %v570_v33 = vadd.f32 %v569_v53, %v568_v34 }
 0x132   : > { %v558_v54 = vpop.xlane.xlu0 %557  ;;  %v548_v29 = vadd.f32 %v547_v49, %v546_v47 }
 0x133   : > { %v585_v48 = vpop.xlane.xlu1 %584  ;;  %v559_v15 = vrot.slane %v558_v54, 4  ;;  %v571_v2 = vrot.slane %v570_v33, 2 }
 0x134   : > { %v586_v50 = vrot.slane %v585_v48, 4  ;;  %v549_v13 = vrot.slane %v548_v29, 2 }
 0x135   : > { %v560_v55 = vadd.f32 %v559_v15, %v558_v54  ;;  %v572_v24 = vadd.f32 %v571_v2, %v570_v33 }
 0x136   : > { %v597_v51 = vpop.xlane.xlu0 %596  ;;  %v587_v31 = vadd.f32 %v586_v50, %v585_v48  ;;  %v550_v8 = vadd.f32 %v549_v13, %v548_v29 }
 0x137   : > { %v607_v37 = vpop.xlane.xlu1 %606  ;;  %v598_v11 = vrot.slane %v597_v51, 4  ;;  %v561_v12 = vrot.slane %v560_v55, 2  ;;  %v573_v7 = vrot.slane %v572_v24, 1 }
 0x138   : > { %v608_v61 = vrot.slane %v607_v37, 4  ;;  %v588_v3 = vrot.slane %v587_v31, 2  ;;  %v551_v44 = vrot.slane %v550_v8, 1 }
 0x139   : > { %v599_v56 = vadd.f32 %v598_v11, %v597_v51  ;;  %v562_v16 = vadd.f32 %v561_v12, %v560_v55  ;;  %v574_v51 = vadd.f32 %v573_v7, %v572_v24 }
 0x13a   : > { %v609_v57 = vadd.f32 %v608_v61, %v607_v37  ;;  %v589_v21 = vadd.f32 %v588_v3, %v587_v31  ;;  %v552_v39 = vadd.f32 %v551_v44, %v550_v8 }
 0x13b   : > { %v636_v14 = vpop.xlane.xlu1 %635  ;;  %v600_v25 = vrot.slane %v599_v56, 2  ;;  %v563_v1 = vrot.slane %v562_v16, 1 }
 0x13c   : > { %v637_v32 = vrot.slane %v636_v14, 4  ;;  %v610_v62 = vrot.slane %v609_v57, 2  ;;  %v590_v41 = vrot.slane %v589_v21, 1 }
 0x13d   : > { %v601_v5 = vadd.f32 %v600_v25, %v599_v56  ;;  %v564_v48 = vadd.f32 %v563_v1, %v562_v16 }
 0x13e   : > { %v638_v4 = vadd.f32 %v637_v32, %v636_v14  ;;  %v611_v9 = vadd.f32 %v610_v62, %v609_v57  ;;  %v591_v29 = vadd.f32 %v590_v41, %v589_v21 }
 0x13f   : > { %v663_v52 = vpop.xlane.xlu1 %662  ;;  %v602_v34 = vrot.slane %v601_v5, 1 }
 0x140   : > { %v664_v59 = vrot.slane %v663_v52, 4  ;;  %v639_v35 = vrot.slane %v638_v4, 2  ;;  %v612_v37 = vrot.slane %v611_v9, 1 }
 0x141   : > { %v603_v11 = vadd.f32 %v602_v34, %v601_v5 }
 0x142   : > { %v665_v26 = vadd.f32 %v664_v59, %v663_v52  ;;  %v640_v18 = vadd.f32 %v639_v35, %v638_v4  ;;  %v613_v13 = vadd.f32 %v612_v37, %v611_v9 }
 0x143   : > { %v685_v60 = vpop.xlane.xlu1 %684 }
 0x144   : > { %v686_v6 = vrot.slane %v685_v60, 4  ;;  %v666_v40 = vrot.slane %v665_v26, 2  ;;  %v641_v50 = vrot.slane %v640_v18, 1 }
 0x146   : > { %v687_v36 = vadd.f32 %v686_v6, %v685_v60  ;;  %v667_v15 = vadd.f32 %v666_v40, %v665_v26  ;;  %v642_v56 = vadd.f32 %v641_v50, %v640_v18 }
 0x148   : > { %v688_v46 = vrot.slane %v687_v36, 2  ;;  %v668_v32 = vrot.slane %v667_v15, 1 }
 0x14a   : > { %v689_v55 = vadd.f32 %v688_v46, %v687_v36 }
 0x1af   : > { %v528_v28 = vpop.xlane.xlu0 %527 }
 0x1b0   : > { %v529_v58 = vrot.slane %v528_v28, 4 }
 0x1b2   : > { %v530_v17 = vadd.f32 %v529_v58, %v528_v28  ;;  %v690_v28 = vrot.slane %v689_v55, 1  ;;  %v669_v58 = vadd.f32 %v668_v32, %v667_v15 }
 0x1b3   : > { %v624_v63 = vpop.xlane.xlu0 %623 }
 0x1b4   : > { %v531_v22 = vrot.slane %v530_v17, 2  ;;  %v625_v23 = vrot.slane %v624_v63, 4  ;;  %v691_v2 = vadd.f32 %v690_v28, %v689_v55 }
 0x1b6   : > { %v626_v30 = vadd.f32 %v625_v23, %v624_v63  ;;  %v532_v27 = vadd.f32 %v531_v22, %v530_v17 }
 0x1b7   : > { %v646_v0 = vpop.xlane.xlu0 %645 }
 0x1b8   : > { %v627_v42 = vrot.slane %v626_v30, 2  ;;  %v647_v10 = vrot.slane %v646_v0, 4  ;;  %v533_v38 = vrot.slane %v532_v27, 1 }
 0x1ba   : > { %v648_v20 = vadd.f32 %v647_v10, %v646_v0  ;;  %v534_v43 = vadd.f32 %v533_v38, %v532_v27  ;;  %v628_v45 = vadd.f32 %v627_v42, %v626_v30 }
 0x1bb   : > { %v675_v47 = vpop.xlane.xlu0 %674 }
 0x1bc   : > { %v649_v54 = vrot.slane %v648_v20, 2  ;;  %v676_v14 = vrot.slane %v675_v47, 4  ;;  %868 = vpush %v534_v43  ;;  %v629_v49 = vrot.slane %v628_v45, 1 }
 0x1bd   : > { %870 = vpush %v552_v39 }
 0x1be   : > { %v677_v53 = vadd.f32 %v676_v14, %v675_v47  ;;  %872 = vpush %v564_v48  ;;  %v650_v52 = vadd.f32 %v649_v54, %v648_v20  ;;  %v630_v61 = vadd.f32 %v629_v49, %v628_v45 }
 0x1bf   : > { %874 = vpush %v574_v51 }
 0x1c0   : > { %v678_v33 = vrot.slane %v677_v53, 2  ;;  %876 = vpush %v591_v29  ;;  %v651_v31 = vrot.slane %v650_v52, 1 }
 0x1c1   : > { %878 = vpush %v603_v11 }
 0x1c2   : > { %v679_v12 = vadd.f32 %v678_v33, %v677_v53  ;;  %880 = vpush %v613_v13  ;;  %v652_v57 = vadd.f32 %v651_v31, %v650_v52 }
 0x1c3   : > { %882 = vpush %v630_v61 }
 0x1c4   : > { %884 = vpush %v642_v56  ;;  %v680_v59 = vrot.slane %v679_v12, 1 }
 0x1c5   : > { %886 = vpush %v652_v57 }
 0x1c6   : > { %888 = vpush %v669_v58  ;;  %v681_v60 = vadd.f32 %v680_v59, %v679_v12 }
 0x1c8   : > { %890 = vpush %v681_v60 }
 0x1c9   : > { %892 = vpush %v691_v2 }
 0x1ed   : > { %s869_s8 = spop %868 }
 0x1ee   : > { %v695_v3 = vstv %s869_s8  ;;  %s871_s17 = spop %870  ;;  %s200_s8 = scalar_lea.vmem [#allocation8], %s1325_s30 }
 0x1ef   : > { %v696_v8 = vsel %vm694_vm10, %v695_v3, 0.0  ;;  %s873_s28 = spop %872  ;;  %v704_v62 = vstv %s871_s17 }
 0x1f0   : > { %v698_v4 = vstv %s873_s28  ;;  %s875_s24 = spop %874 }
 0x1f1   : > { %v699_v17 = vsel %vm697_vm11, %v698_v4, %v696_v8  ;;  %s576_s25 = sadd.f32 %s875_s24, %s871_s17  ;;  %s877_s29 = spop %876 }
 0x1f2   : > { %s879_s6 = spop %878  ;;  %v713_v23 = vstv %s877_s29  ;;  %s748_s17 = sshll.u32 %s200_s8, 4  ;;  %s1725_s17 = int_to_ptr.vmem [resolvable:$true] %s748_s17 }
 0x1f3   : > { %v701_v25 = vstv %s576_s25  ;;  %s881_s7 = spop %880  ;;  %v707_v16 = vstv %s879_s6  ;;  %s1723_s25 = scalar_lea.hbm %s1769_s2, %s863_s20 }
 0x1f4   : > { %v702_v63 = vsel %vm700_vm12, %v701_v25, %v699_v17  ;;  %s615_s14 = sadd.f32 %s881_s7, %s877_s29  ;;  %s883_s16 = spop %882 }
 0x1f5   : > { %v705_v6 = vsel %vm703_vm13, %v704_v62, %v702_v63  ;;  %s885_s4 = spop %884  ;;  %v722_v27 = vstv %s883_s16  ;;  %s1076_s29 = scalar_lea.vmem %s1725_s17, 16 }
 0x1f6   : > { %v708_v22 = vsel %vm706_vm14, %v707_v16, %v705_v6  ;;  %v710_v26 = vstv %s615_s14  ;;  %s887_s19 = spop %886  ;;  %v716_v21 = vstv %s885_s4  ;;  %p1077_p13 = scmp.ne.s32.totalorder %s1725_s17, %s1076_s29 }
 0x1f7   : > { %v711_v44 = vsel %vm709_vm15, %v710_v26, %v708_v22  ;;  %s654_s3 = sadd.f32 %s887_s19, %s883_s16  ;;  %s889_s23 = spop %888 }
 0x1f8   : > { %v714_v24 = vsel %vm712_vm0, %v713_v23, %v711_v44  ;;  %v731_v40 = vstv %s889_s23  ;;  %p1078_p12 = pnand %p1077_p13, %p1779_p1  ;;  %s1155_s6 = smov [#allocation8]  }
 0x1f9   : > { %v717_v35 = vsel %vm715_vm1, %v716_v21, %v714_v24  ;;  %v719_v30 = vstv %s654_s3  ;;  %s891_s26 = spop %890  ;;  %s1080_s7 = sshll.u32 %s1155_s6, 4  ;;  %s1081_s7 = int_to_ptr.vmem [resolvable:$false] %s1080_s7 }
 0x1fa   : > { %v720_v36 = vsel %vm718_vm2, %v719_v30, %v717_v35  ;;  %v725_v0 = vstv %s891_s26  ;;  %s893_s27 = spop %892  ;;  %p1079_p10 = pneg %p1078_p12 }
 0x1fb   : > { %v723_v1 = vsel %vm721_vm3, %v722_v27, %v720_v36  ;;  %s693_s5 = sadd.f32 %s893_s27, %s889_s23  ;;  %s1082_s14 = scalar_lea.vmem %s1081_s7, 32 }
 0x1fc   : > { %v726_v5 = vsel %vm724_vm4, %v725_v0, %v723_v1  ;;  %p1083_p5 = scmp.lt.s32.totalorder %s1725_s17, %s1081_s7  ;;  %p1084_p7 = scmp.lt.s32.totalorder %s1082_s14, %s1076_s29 }
 0x1fd   : > { %v728_v9 = vstv %s693_s5 }
 0x1fe   : > { %v729_v42 = vsel %vm727_vm5, %v728_v9, %v726_v5  ;;  %p1085_p9 = por %p1084_p7, %p1083_p5 }
 0x1ff   : > { %v732_v10 = vsel %vm730_vm6, %v731_v40, %v729_v42 }
 0x200   : > { %734 = vst.msk [vmem:[%s200_s8] sm:$0x1] %vm733_vm7, %v732_v10  ;;  %p1086_p11 = pnand %p1085_p9, %p1079_p10 }
 0x202   : > { %1089 = shalt.err (!%p1086_p11)
}
 0x203   : > { %s1090_s30 = scalar_lea.hbm %s1723_s25, 16  ;;  %s1094_s19 = scalar_lea.hbm %s1769_s2, 32 }
 0x204   : > { %p1091_p3 = scmp.ne.s32.totalorder %s1723_s25, %s1090_s30  ;;  %p1095_p2 = scmp.lt.u32.totalorder %s1723_s25, %s1769_s2 }
 0x205   : > { %p1096_p4 = scmp.lt.u32.totalorder %s1094_s19, %s1090_s30  ;;  %p1098_p13 = scmp.lt.u32.totalorder %s1090_s30, %s1723_s25 }
 0x206   : > { %p1092_p8 = pnand %p1091_p3, %p1779_p1 }
 0x207   : > { %p1097_p6 = por %p1096_p4, %p1095_p2 }
 0x208   : > { %p1093_p0 = pneg %p1092_p8 }
 0x209   : > { %p1099_p12 = por %p1098_p13, %p1097_p6 }
 0x20b   : > { %p1100_p10 = pnand %p1099_p12, %p1093_p0 }
 0x20d   : > { %1103 = shalt.err (!%p1100_p10)
}
 0x20e   : > { %898 = dma.vmem_to_hbm [thread:$0]  (%p1779_p1), %s1725_s17, 16, %s1723_s25, %s736_s13  }
 0x20f PF: > { %s760_s26 = sand.u32 1, %s1134_s9   ;;  %p1780_p5 = scmp.ne.s32.totalorder %s1775_s22, 0 }
 0x210   : > { %p1781_p7 = scmp.ge.s32.totalorder %s1146_s12, 2  ;;  %s761_s27 = scalar_lea.sflag [#allocation5], %s760_s26 }
 0x212   : > { %p908_p9 = pnand %p1781_p7, %p1780_p5 }
 0x214   : > { %1129 = dma.done.wait (!%p908_p9), %s761_s27, 16  }
 0x215   : > { %1131 = vsyncadd (!%p908_p9), %s761_s27, 4294967280  ;;  %p18_p11 = scmp.ge.s32.totalorder %s1196_s15, 4   ;;  %s1782_s9 = smov %s1138_s10 }
 0x216   : > { %s1783_s10 = smov %s1142_s11  ;;  %s1784_s11 = smov %s1208_s18 }
 0x217   : > { %s1785_s12 = smov %s1196_s15  ;;  %20 = sbr.rel (!%p18_p11) target bundleno = 7 (0x7), region = 92 }
 0x21e   :  { %765 = vsyncpa [#allocation4], 1 }
 0x21f   :  { %767 = vsyncpa [#allocation4 + $0x1], 1 }
 0x220   :  { %768 = vsyncpa [#allocation7], 1 }
 0x221   :  { %770 = vsyncpa [#allocation7 + $0x1], 1 }
 0x222   :  { %771 = vsyncpa [#allocation5], 1 }
 0x223   :  { %773 = vsyncpa [#allocation5 + $0x1], 1 }

</bundles_post_ra>
